<compile_context>
chip_gen: v7x
topology: tpu7x:2x2x1
jax: 0.10.0
libtpu: 0.0.40
codegen_flags: <defaults>
</compile_context>

<pallas_src>
import functools

import jax
import jax.numpy as jnp
from jax import lax
from jax.experimental import pallas as pl
from jax.experimental.pallas import tpu as pltpu


def _gat_kernel(x_ref, w_ref, asrc_ref, adst_ref, hexp_ref, src_ref, dst_ref,
                out_ref,
                wh_ref, ssrc_ref, m_ref, l_ref, ids_ref,
                *, alpha, num_edges, mm_dtype):
    b = pl.program_id(0)
    nb = pl.num_programs(0)
    TE = src_ref.shape[0]            # edges per block

    # ---- step 0: one-time per-node precompute + accumulator init -------------
    @pl.when(b == 0)
    def _():
        # Wh_all: (N_pad, HF_pad) for every head at once (single wide MXU matmul).
        Wh = jnp.dot(x_ref[...], w_ref[...], preferred_element_type=jnp.float32)
        wh_ref[...] = Wh.astype(mm_dtype)
        # Per-node source scores per head: s_src[n, h] = Wh[h][n] . a_src[h]
        ssrc_ref[...] = jnp.dot(Wh, asrc_ref[...],
                                preferred_element_type=jnp.float32).astype(mm_dtype)
        m_ref[...] = jnp.full_like(m_ref, -1e30)    # running max (finite sentinel)
        l_ref[...] = jnp.zeros_like(l_ref)          # running softmax denominator
        out_ref[...] = jnp.zeros_like(out_ref)      # out_ref doubles as accumulator
        # Hoisted, block-invariant node-id iota for the one-hot compares.
        ids_ref[...] = lax.broadcasted_iota(jnp.int32, ids_ref.shape, 1)

    # ---- per-edge-block one-hot gather (bf16 selection, f32 accumulation) ----
    node_ids = ids_ref[...]                                     # (TE, N_pad)
    src_oh = (src_ref[...] == node_ids).astype(mm_dtype)        # (TE, N_pad)
    dst_oh = (dst_ref[...] == node_ids).astype(mm_dtype)        # (TE, N_pad)

    Wh_j = jnp.dot(dst_oh, wh_ref[...],
                   preferred_element_type=jnp.float32)          # (TE, HF_pad)
    s_src_e = jnp.dot(src_oh, ssrc_ref[...],
                      preferred_element_type=jnp.float32)       # (TE, H)
    # s_dst per edge from the already-gathered Wh_j (no third gather over N).
    s_dst_e = jnp.dot(Wh_j, adst_ref[...],
                      preferred_element_type=jnp.float32)       # (TE, H)

    # Attention logits + LeakyReLU, then mask padded edges of the last block.
    e = s_src_e + s_dst_e
    e = jnp.where(e > 0, e, alpha * e)
    row = lax.broadcasted_iota(jnp.int32, (TE, 1), 0)
    e = jnp.where(b * TE + row < num_edges, e, -1e30)

    # ---- online softmax over ALL edges (dim=0 in reference), per head --------
    # All bookkeeping stays narrow: (TE, H) / (1, H).
    m_prev = m_ref[...]
    m_new = jnp.maximum(m_prev, jnp.max(e, axis=0, keepdims=True))
    corr = jnp.exp(m_prev - m_new)                              # (1, H)
    p = jnp.exp(e - m_new)                                      # (TE, H)
    l_ref[...] = l_ref[...] * corr + jnp.sum(p, axis=0, keepdims=True)
    m_ref[...] = m_new

    # Widen per-head quantities only where they meet the lane-dense slab.
    p_wide = jnp.dot(p, hexp_ref[...],
                     preferred_element_type=jnp.float32)        # (TE, HF_pad)
    corr_wide = jnp.dot(corr, hexp_ref[...],
                        preferred_element_type=jnp.float32)     # (1, HF_pad)

    # TODO(synk): attention dropout is identity here (inference mode).

    # scatter_add by destination node: out[n] += sum_e dst_oh[e,n] * p[e] * Wh_j[e]
    weighted = (p_wide * Wh_j).astype(mm_dtype)                 # (TE, HF_pad)
    # NOTE: transposed-LHS contraction; verified path — if a bundle dump ever
    # shows an XLU transpose of dst_oh, build the one-hot in (N, TE) orientation.
    scat = lax.dot_general(dst_oh, weighted, (((0,), (0,)), ((), ())),
                           preferred_element_type=jnp.float32)  # (N_pad, HF_pad)
    out_ref[...] = out_ref[...] * corr_wide + scat

    # ---- finalize on the last edge block --------------------------------------
    @pl.when(b == nb - 1)
    def _():
        inv_l = pl.reciprocal(l_ref[...], approx=False)         # (1, H), runs once
        inv_wide = jnp.dot(inv_l, hexp_ref[...],
                           preferred_element_type=jnp.float32)  # (1, HF_pad)
        out_ref[...] = out_ref[...] * inv_wide


def _round_up(v, m):
    return ((v + m - 1) // m) * m


def _vmem_capacity_bytes():
    """Per-core VMEM capacity; conservative 64 MiB (v7x) fallback."""
    try:
        info = pltpu.get_tpu_info()
        cap = int(getattr(info, "vmem_capacity_bytes", 0) or 0)
        if cap > 0:
            return cap
    except Exception:
        pass
    return 64 * 1024 * 1024


def _choose_edge_block(requested, E, N_pad, HF_pad, Fin, vmem_limit, mm_bytes):
    """Pick the edge tile so residents + per-edge-row live data fit in VMEM."""
    resident = (
        N_pad * HF_pad * mm_bytes                # Wh scratch
        + N_pad * 128 * mm_bytes                 # s_src scratch (lane padded)
        + 2 * N_pad * HF_pad * 4                 # out accumulator (worst case x2)
        + N_pad * HF_pad * 4                     # scat temporary
        + 2 * N_pad * max(Fin, 128) * 4          # x (double-buffered, lane padded)
        + 2 * _round_up(Fin, 8) * HF_pad * 4     # W_all
        + 2 * 2 * HF_pad * 128 * 4               # A_src + A_dst
        + 2 * 8 * HF_pad * 4                     # head_expand
        + (2 << 20)                              # headroom
    )
    per_row = (
        N_pad * 4                                # hoisted node-id iota scratch
        + 2 * N_pad * mm_bytes                   # the two live one-hots
        + 2 * N_pad * 4                          # compare / cast temporaries
        + 4 * HF_pad * 4                         # Wh_j / p_wide / weighted rows
        + 2 * 2 * 128 * 4                        # src/dst index blocks
    )
    budget = int(vmem_limit * 0.7) - resident
    cap = max(32, (budget // per_row) // 32 * 32) if budget > 0 else 32
    te = 1024 if requested is None else requested
    te = min(te, cap, _round_up(max(E, 1), 32))
    te = max(32, (te // 32) * 32)
    return te


def gat_forward(x, edge_index, W, a, *, alpha=0.2, concat=True,
                edge_block=None, matmul_dtype=jnp.bfloat16):
    """Pallas GAT layer forward.
    x: (N, Fin) f32, edge_index: (2, E) int32,
    W: (H, Fin, Fout) f32, a: (H, 2*Fout, 1) f32."""
    N, Fin = x.shape
    H, _, Fout = W.shape
    E = edge_index.shape[1]
    HF = H * Fout
    HF_pad = _round_up(HF, 128)      # lane-dense output / accumulator slab
    N_pad = _round_up(N, 128)        # lane-dense (TE, N) one-hots
    mm_bytes = jnp.dtype(matmul_dtype).itemsize

    vmem_cap = _vmem_capacity_bytes()
    vmem_limit = int(min(max(int(0.85 * vmem_cap), 32 * 1024 * 1024),
                         128 * 1024 * 1024))
    te = _choose_edge_block(edge_block, E, N_pad, HF_pad, Fin, vmem_limit, mm_bytes)
    num_blocks = (E + te - 1) // te
    e_pad = num_blocks * te

    xf = jnp.zeros((N_pad, Fin), jnp.float32).at[:N].set(x.astype(jnp.float32))

    # All-head weight slab: W_all[i, h*Fout + f] = W[h, i, f], zero-padded to HF_pad.
    W_all = jnp.transpose(W.astype(jnp.float32), (1, 0, 2)).reshape(Fin, HF)
    W_all = jnp.zeros((Fin, HF_pad), jnp.float32).at[:, :HF].set(W_all)

    # Block-diagonal per-head score projections (padded rows are zero).
    a_src = a[:, :Fout, 0].astype(jnp.float32)                   # (H, Fout)
    a_dst = a[:, Fout:, 0].astype(jnp.float32)                   # (H, Fout)
    eye = jnp.eye(H, dtype=jnp.float32)
    A_src = (a_src[:, :, None] * eye[:, None, :]).reshape(HF, H)
    A_dst = (a_dst[:, :, None] * eye[:, None, :]).reshape(HF, H)
    A_src = jnp.zeros((HF_pad, H), jnp.float32).at[:HF].set(A_src)
    A_dst = jnp.zeros((HF_pad, H), jnp.float32).at[:HF].set(A_dst)
    # Head -> feature-lane expansion matrix (padded columns are zero).
    head_expand = jnp.zeros((H, HF_pad), jnp.float32).at[:, :HF].set(
        jnp.repeat(eye, Fout, axis=1))

    src = edge_index[0].astype(jnp.int32)
    dst = edge_index[1].astype(jnp.int32)
    if e_pad > E:
        pad = jnp.zeros((e_pad - E,), jnp.int32)
        src = jnp.concatenate([src, pad])
        dst = jnp.concatenate([dst, pad])
    src = src.reshape(e_pad, 1)
    dst = dst.reshape(e_pad, 1)

    kernel = functools.partial(_gat_kernel, alpha=alpha, num_edges=E,
                               mm_dtype=matmul_dtype)

    out = pl.pallas_call(
        kernel,
        out_shape=jax.ShapeDtypeStruct((N_pad, HF_pad), jnp.float32),
        grid_spec=pltpu.PrefetchScalarGridSpec(
            num_scalar_prefetch=0,
            grid=(num_blocks,),
            in_specs=[
                pl.BlockSpec((N_pad, Fin), lambda b: (0, 0)),     # x (resident)
                pl.BlockSpec((Fin, HF_pad), lambda b: (0, 0)),    # W_all
                pl.BlockSpec((HF_pad, H), lambda b: (0, 0)),      # A_src
                pl.BlockSpec((HF_pad, H), lambda b: (0, 0)),      # A_dst
                pl.BlockSpec((H, HF_pad), lambda b: (0, 0)),      # head_expand
                pl.BlockSpec((te, 1), lambda b: (b, 0)),          # src idx block
                pl.BlockSpec((te, 1), lambda b: (b, 0)),          # dst idx block
            ],
            out_specs=pl.BlockSpec((N_pad, HF_pad), lambda b: (0, 0)),  # lane-dense acc
            scratch_shapes=[
                pltpu.VMEM((N_pad, HF_pad), matmul_dtype),  # Wh_all
                pltpu.VMEM((N_pad, H), matmul_dtype),       # s_src per node
                pltpu.VMEM((1, H), jnp.float32),            # running max (narrow)
                pltpu.VMEM((1, H), jnp.float32),            # running denom (narrow)
                pltpu.VMEM((te, N_pad), jnp.int32),         # hoisted node-id iota
            ],
        ),
        compiler_params=pltpu.CompilerParams(
            dimension_semantics=("arbitrary",),     # edge axis carries accumulator
            vmem_limit_bytes=vmem_limit,
        ),
    )(xf, W_all, A_src, A_dst, head_expand, src, dst)

    out = out[:N, :HF]
    if concat:
        return out                                  # (N, H*Fout), torch.cat layout
    return out.reshape(N, H, Fout).mean(axis=1)


def gat_reference(x, edge_index, W, a, *, alpha=0.2, concat=True):
    """Pure-JAX re-implementation of the PyTorch forward (eval mode)."""
    H, _, Fout = W.shape
    N = x.shape[0]
    outs = []
    for k in range(H):
        Wh = x @ W[k]
        Wh_i = Wh[edge_index[0], :]
        Wh_j = Wh[edge_index[1], :]
        e = (jnp.concatenate([Wh_i, Wh_j], axis=1) @ a[k])[:, 0]
        e = jnp.where(e > 0, e, alpha * e)
        att = jax.nn.softmax(e, axis=0)
        h = jnp.zeros((N, Fout), jnp.float32).at[edge_index[1]].add(
            att[:, None] * Wh_j)
        outs.append(h)
    if concat:
        return jnp.concatenate(outs, axis=1)
    return jnp.mean(jnp.stack(outs, axis=0), axis=0)


def init_params(key, in_features, out_features, heads, alpha):
    """Deterministic xavier_uniform-style init (gain for leaky_relu(alpha))."""
    gain = (2.0 / (1.0 + alpha ** 2)) ** 0.5
    kW, ka = jax.random.split(key)
    bw = gain * (6.0 / (in_features * out_features + heads * out_features)) ** 0.5
    W = jax.random.uniform(kW, (heads, in_features, out_features),
                           jnp.float32, -bw, bw)
    ba = gain * (6.0 / (2 * out_features + heads)) ** 0.5
    a = jax.random.uniform(ka, (heads, 2 * out_features, 1),
                           jnp.float32, -ba, ba)
    return W, a


if __name__ == "__main__":
    key = jax.random.PRNGKey(0)
    k_x, k_e, k_p = jax.random.split(key, 3)

    N = 16            # nodes
    E = 40            # edges
    in_features = 8
    out_features = 16
    heads = 2
    alpha = 0.2

    x = jax.random.normal(k_x, (N, in_features), jnp.float32)
    edge_index = jax.random.randint(k_e, (2, E), 0, N, jnp.int32)
    W, a = init_params(k_p, in_features, out_features, heads, alpha)

    # edge_block=32 -> 2 edge blocks: exercises the online-softmax accumulation
    # and the padded-edge masking on the last block.
    out = gat_forward(x, edge_index, W, a, alpha=alpha, concat=True,
                      edge_block=32)
    out = jax.block_until_ready(out)

    ref = gat_reference(x, edge_index, W, a, alpha=alpha, concat=True)
    assert out.shape == (N, heads * out_features), out.shape
    # bf16 gather/scatter operands -> relaxed tolerance vs f32 reference.
    assert jnp.allclose(out, ref, rtol=2e-2, atol=2e-3), \
        float(jnp.max(jnp.abs(out - ref)))

    out_mean = gat_forward(x, edge_index, W, a, alpha=alpha, concat=False,
                           edge_block=32)
    out_mean = jax.block_until_ready(out_mean)
    ref_mean = gat_reference(x, edge_index, W, a, alpha=alpha, concat=False)
    assert jnp.allclose(out_mean, ref_mean, rtol=2e-2, atol=2e-3), \
        float(jnp.max(jnp.abs(out_mean - ref_mean)))

    print("KERNEL_OK")
</pallas_src>

<mosaic_0001>
module attributes {stable_mosaic.version = 11 : i64} {
  func.func @_gat_kernel(%arg0: i32, %arg1: memref<128x8xf32, #tpu.memory_space<vmem>>, %arg2: memref<8x128xf32, #tpu.memory_space<vmem>>, %arg3: memref<128x2xf32, #tpu.memory_space<vmem>>, %arg4: memref<128x2xf32, #tpu.memory_space<vmem>>, %arg5: memref<2x128xf32, #tpu.memory_space<vmem>>, %arg6: memref<32x1xi32, #tpu.memory_space<vmem>>, %arg7: memref<32x1xi32, #tpu.memory_space<vmem>>, %arg8: memref<128x128xf32, #tpu.memory_space<vmem>>, %arg9: memref<128x128xbf16, #tpu.memory_space<vmem>>, %arg10: memref<128x2xbf16, #tpu.memory_space<vmem>>, %arg11: memref<1x2xf32, #tpu.memory_space<vmem>>, %arg12: memref<1x2xf32, #tpu.memory_space<vmem>>, %arg13: memref<32x128xi32, #tpu.memory_space<vmem>>) attributes {dimension_semantics = [#tpu.dimension_semantics<arbitrary>], iteration_bounds = array<i64: 2>, scalar_prefetch = 0 : i64, scratch_operands = 5 : i64, tpu.core_type = #tpu.core_type<tc>, window_params = [{pipeline_mode = #tpu.pipeline_mode<synchronous>, transform_indices = @transform_0, window_bounds = array<i64: 128, 8>}, {pipeline_mode = #tpu.pipeline_mode<synchronous>, transform_indices = @transform_1, window_bounds = array<i64: 8, 128>}, {pipeline_mode = #tpu.pipeline_mode<synchronous>, transform_indices = @transform_2, window_bounds = array<i64: 128, 2>}, {pipeline_mode = #tpu.pipeline_mode<synchronous>, transform_indices = @transform_3, window_bounds = array<i64: 128, 2>}, {pipeline_mode = #tpu.pipeline_mode<synchronous>, transform_indices = @transform_4, window_bounds = array<i64: 2, 128>}, {transform_indices = @transform_5, window_bounds = array<i64: 32, 1>}, {transform_indices = @transform_6, window_bounds = array<i64: 32, 1>}, {pipeline_mode = #tpu.pipeline_mode<synchronous>, transform_indices = @transform_7, window_bounds = array<i64: 128, 128>}]} {
    %c0_i32 = arith.constant 0 : i32
    %0 = arith.cmpi eq, %arg0, %c0_i32 : i32
    %1 = arith.extui %0 : i1 to i32
    %c0_i32_0 = arith.constant 0 : i32
    %2 = arith.cmpi ne, %1, %c0_i32_0 : i32
    scf.if %2 {
      %c0_39 = arith.constant 0 : index
      %c0_40 = arith.constant 0 : index
      %69 = vector.load %arg1[%c0_39, %c0_40] : memref<128x8xf32, #tpu.memory_space<vmem>>, vector<128x8xf32>
      %c0_41 = arith.constant 0 : index
      %c0_42 = arith.constant 0 : index
      %70 = vector.load %arg2[%c0_41, %c0_42] : memref<8x128xf32, #tpu.memory_space<vmem>>, vector<8x128xf32>
      %cst_43 = arith.constant dense<0.000000e+00> : vector<128x128xf32>
      %71 = tpu.matmul %69, %70, %cst_43 {dimension_numbers = #tpu.dot_dimension_numbers<[1], [0], [0], [1], [0, 0, 1, 1], [], []>} : vector<128x8xf32>, vector<8x128xf32>, vector<128x128xf32> -> vector<128x128xf32>
      %72 = arith.truncf %71 : vector<128x128xf32> to vector<128x128xbf16>
      %c0_44 = arith.constant 0 : index
      %c0_45 = arith.constant 0 : index
      %73 = vector.load %arg9[%c0_44, %c0_45] : memref<128x128xbf16, #tpu.memory_space<vmem>>, vector<128x128xbf16>
      tpu.vector_store %arg9[%c0_44, %c0_45], %72 {strides = array<i32>} : memref<128x128xbf16, #tpu.memory_space<vmem>>, vector<128x128xbf16>,
      %c0_46 = arith.constant 0 : index
      %c0_47 = arith.constant 0 : index
      %74 = vector.load %arg3[%c0_46, %c0_47] : memref<128x2xf32, #tpu.memory_space<vmem>>, vector<128x2xf32>
      %cst_48 = arith.constant dense<0.000000e+00> : vector<128x2xf32>
      %75 = tpu.matmul %71, %74, %cst_48 {dimension_numbers = #tpu.dot_dimension_numbers<[1], [0], [0], [1], [0, 0, 1, 1], [], []>} : vector<128x128xf32>, vector<128x2xf32>, vector<128x2xf32> -> vector<128x2xf32>
      %76 = arith.truncf %75 : vector<128x2xf32> to vector<128x2xbf16>
      %c0_49 = arith.constant 0 : index
      %c0_50 = arith.constant 0 : index
      %77 = vector.load %arg10[%c0_49, %c0_50] : memref<128x2xbf16, #tpu.memory_space<vmem>>, vector<128x2xbf16>
      tpu.vector_store %arg10[%c0_49, %c0_50], %76 {strides = array<i32>} : memref<128x2xbf16, #tpu.memory_space<vmem>>, vector<128x2xbf16>,
      %cst_51 = arith.constant -1.000000e+30 : f32
      %78 = vector.broadcast %cst_51 : f32 to vector<1x2xf32>
      %c0_52 = arith.constant 0 : index
      %c0_53 = arith.constant 0 : index
      %79 = vector.load %arg11[%c0_52, %c0_53] : memref<1x2xf32, #tpu.memory_space<vmem>>, vector<1x2xf32>
      tpu.vector_store %arg11[%c0_52, %c0_53], %78 {strides = array<i32>} : memref<1x2xf32, #tpu.memory_space<vmem>>, vector<1x2xf32>,
      %cst_54 = arith.constant 0.000000e+00 : f32
      %80 = vector.broadcast %cst_54 : f32 to vector<1x2xf32>
      %c0_55 = arith.constant 0 : index
      %c0_56 = arith.constant 0 : index
      %81 = vector.load %arg12[%c0_55, %c0_56] : memref<1x2xf32, #tpu.memory_space<vmem>>, vector<1x2xf32>
      tpu.vector_store %arg12[%c0_55, %c0_56], %80 {strides = array<i32>} : memref<1x2xf32, #tpu.memory_space<vmem>>, vector<1x2xf32>,
      %cst_57 = arith.constant 0.000000e+00 : f32
      %82 = vector.broadcast %cst_57 : f32 to vector<128x128xf32>
      %c0_58 = arith.constant 0 : index
      %c0_59 = arith.constant 0 : index
      %83 = vector.load %arg8[%c0_58, %c0_59] : memref<128x128xf32, #tpu.memory_space<vmem>>, vector<128x128xf32>
      tpu.vector_store %arg8[%c0_58, %c0_59], %82 {strides = array<i32>} : memref<128x128xf32, #tpu.memory_space<vmem>>, vector<128x128xf32>,
      %84 = tpu.iota {dimensions = array<i32: 1>} : vector<32x128xi32>
      %c0_60 = arith.constant 0 : index
      %c0_61 = arith.constant 0 : index
      %85 = vector.load %arg13[%c0_60, %c0_61] : memref<32x128xi32, #tpu.memory_space<vmem>>, vector<32x128xi32>
      tpu.vector_store %arg13[%c0_60, %c0_61], %84 {strides = array<i32>} : memref<32x128xi32, #tpu.memory_space<vmem>>, vector<32x128xi32>,
    } else {
    }
    %c0 = arith.constant 0 : index
    %c0_1 = arith.constant 0 : index
    %3 = vector.load %arg13[%c0, %c0_1] : memref<32x128xi32, #tpu.memory_space<vmem>>, vector<32x128xi32>
    %c0_2 = arith.constant 0 : index
    %c0_3 = arith.constant 0 : index
    %4 = vector.load %arg6[%c0_2, %c0_3] : memref<32x1xi32, #tpu.memory_space<vmem>>, vector<32x1xi32>
    %5 = vector.broadcast %4 : vector<32x1xi32> to vector<32x128xi32>
    %6 = arith.cmpi eq, %5, %3 : vector<32x128xi32>
    %7 = arith.extui %6 : vector<32x128xi1> to vector<32x128xi32>
    %8 = arith.sitofp %7 : vector<32x128xi32> to vector<32x128xf32>
    %9 = arith.truncf %8 : vector<32x128xf32> to vector<32x128xbf16>
    %c0_4 = arith.constant 0 : index
    %c0_5 = arith.constant 0 : index
    %10 = vector.load %arg7[%c0_4, %c0_5] : memref<32x1xi32, #tpu.memory_space<vmem>>, vector<32x1xi32>
    %11 = vector.broadcast %10 : vector<32x1xi32> to vector<32x128xi32>
    %12 = arith.cmpi eq, %11, %3 : vector<32x128xi32>
    %13 = arith.extui %12 : vector<32x128xi1> to vector<32x128xi32>
    %14 = arith.sitofp %13 : vector<32x128xi32> to vector<32x128xf32>
    %15 = arith.truncf %14 : vector<32x128xf32> to vector<32x128xbf16>
    %c0_6 = arith.constant 0 : index
    %c0_7 = arith.constant 0 : index
    %16 = vector.load %arg9[%c0_6, %c0_7] : memref<128x128xbf16, #tpu.memory_space<vmem>>, vector<128x128xbf16>
    %cst = arith.constant dense<0.000000e+00> : vector<32x128xf32>
    %17 = tpu.matmul %15, %16, %cst {dimension_numbers = #tpu.dot_dimension_numbers<[1], [0], [0], [1], [0, 0, 1, 1], [], []>} : vector<32x128xbf16>, vector<128x128xbf16>, vector<32x128xf32> -> vector<32x128xf32>
    %c0_8 = arith.constant 0 : index
    %c0_9 = arith.constant 0 : index
    %18 = vector.load %arg10[%c0_8, %c0_9] : memref<128x2xbf16, #tpu.memory_space<vmem>>, vector<128x2xbf16>
    %cst_10 = arith.constant dense<0.000000e+00> : vector<32x2xf32>
    %19 = tpu.matmul %9, %18, %cst_10 {dimension_numbers = #tpu.dot_dimension_numbers<[1], [0], [0], [1], [0, 0, 1, 1], [], []>} : vector<32x128xbf16>, vector<128x2xbf16>, vector<32x2xf32> -> vector<32x2xf32>
    %c0_11 = arith.constant 0 : index
    %c0_12 = arith.constant 0 : index
    %20 = vector.load %arg4[%c0_11, %c0_12] : memref<128x2xf32, #tpu.memory_space<vmem>>, vector<128x2xf32>
    %cst_13 = arith.constant dense<0.000000e+00> : vector<32x2xf32>
    %21 = tpu.matmul %17, %20, %cst_13 {dimension_numbers = #tpu.dot_dimension_numbers<[1], [0], [0], [1], [0, 0, 1, 1], [], []>} : vector<32x128xf32>, vector<128x2xf32>, vector<32x2xf32> -> vector<32x2xf32>
    %22 = arith.addf %19, %21 : vector<32x2xf32>
    %cst_14 = arith.constant 0.000000e+00 : f32
    %23 = vector.broadcast %cst_14 : f32 to vector<32x2xf32>
    %24 = arith.cmpf ogt, %22, %23 : vector<32x2xf32>
    %cst_15 = arith.constant 2.000000e-01 : f32
    %25 = vector.broadcast %cst_15 : f32 to vector<32x2xf32>
    %26 = arith.mulf %25, %22 : vector<32x2xf32>
    %27 = arith.select %24, %22, %26 : vector<32x2xi1>, vector<32x2xf32>
    %28 = tpu.iota {dimensions = array<i32: 0>} : vector<32x1xi32>
    %c32_i32 = arith.constant 32 : i32
    %29 = arith.muli %arg0, %c32_i32 : i32
    %30 = vector.broadcast %29 : i32 to vector<32x1xi32>
    %31 = arith.addi %30, %28 : vector<32x1xi32>
    %c40_i32 = arith.constant 40 : i32
    %32 = vector.broadcast %c40_i32 : i32 to vector<32x1xi32>
    %33 = arith.cmpi slt, %31, %32 : vector<32x1xi32>
    %cst_16 = arith.constant -1.000000e+30 : f32
    %34 = vector.shape_cast %33 : vector<32x1xi1> to vector<32x1xi1>
    %35 = vector.broadcast %34 : vector<32x1xi1> to vector<32x2xi1>
    %36 = vector.broadcast %cst_16 : f32 to vector<32x2xf32>
    %37 = arith.select %35, %27, %36 : vector<32x2xi1>, vector<32x2xf32>
    %c0_17 = arith.constant 0 : index
    %c0_18 = arith.constant 0 : index
    %38 = vector.load %arg11[%c0_17, %c0_18] : memref<1x2xf32, #tpu.memory_space<vmem>>, vector<1x2xf32>
    %cst_19 = arith.constant dense<0xFF800000> : vector<2xf32>
    %39 = vector.multi_reduction <maximumf>, %37, %cst_19 [0] : vector<32x2xf32> to vector<2xf32>
    %40 = vector.shape_cast %39 : vector<2xf32> to vector<1x2xf32>
    %41 = arith.maximumf %38, %40 : vector<1x2xf32>
    %42 = arith.subf %38, %41 : vector<1x2xf32>
    %43 = math.exp %42 : vector<1x2xf32>
    %44 = vector.broadcast %41 : vector<1x2xf32> to vector<32x2xf32>
    %45 = arith.subf %37, %44 : vector<32x2xf32>
    %46 = math.exp %45 : vector<32x2xf32>
    %c0_20 = arith.constant 0 : index
    %c0_21 = arith.constant 0 : index
    %47 = vector.load %arg12[%c0_20, %c0_21] : memref<1x2xf32, #tpu.memory_space<vmem>>, vector<1x2xf32>
    %48 = arith.mulf %47, %43 : vector<1x2xf32>
    %cst_22 = arith.constant dense<0.000000e+00> : vector<2xf32>
    %49 = vector.multi_reduction <add>, %46, %cst_22 [0] : vector<32x2xf32> to vector<2xf32>
    %50 = vector.shape_cast %49 : vector<2xf32> to vector<1x2xf32>
    %51 = arith.addf %48, %50 : vector<1x2xf32>
    %c0_23 = arith.constant 0 : index
    %c0_24 = arith.constant 0 : index
    %52 = vector.load %arg12[%c0_23, %c0_24] : memref<1x2xf32, #tpu.memory_space<vmem>>, vector<1x2xf32>
    tpu.vector_store %arg12[%c0_23, %c0_24], %51 {strides = array<i32>} : memref<1x2xf32, #tpu.memory_space<vmem>>, vector<1x2xf32>,
    %c0_25 = arith.constant 0 : index
    %c0_26 = arith.constant 0 : index
    %53 = vector.load %arg11[%c0_25, %c0_26] : memref<1x2xf32, #tpu.memory_space<vmem>>, vector<1x2xf32>
    tpu.vector_store %arg11[%c0_25, %c0_26], %41 {strides = array<i32>} : memref<1x2xf32, #tpu.memory_space<vmem>>, vector<1x2xf32>,
    %c0_27 = arith.constant 0 : index
    %c0_28 = arith.constant 0 : index
    %54 = vector.load %arg5[%c0_27, %c0_28] : memref<2x128xf32, #tpu.memory_space<vmem>>, vector<2x128xf32>
    %cst_29 = arith.constant dense<0.000000e+00> : vector<32x128xf32>
    %55 = tpu.matmul %46, %54, %cst_29 {dimension_numbers = #tpu.dot_dimension_numbers<[1], [0], [0], [1], [0, 0, 1, 1], [], []>} : vector<32x2xf32>, vector<2x128xf32>, vector<32x128xf32> -> vector<32x128xf32>
    %c0_30 = arith.constant 0 : index
    %c0_31 = arith.constant 0 : index
    %56 = vector.load %arg5[%c0_30, %c0_31] : memref<2x128xf32, #tpu.memory_space<vmem>>, vector<2x128xf32>
    %cst_32 = arith.constant dense<0.000000e+00> : vector<1x128xf32>
    %57 = tpu.matmul %43, %56, %cst_32 {dimension_numbers = #tpu.dot_dimension_numbers<[1], [0], [0], [1], [0, 0, 1, 1], [], []>} : vector<1x2xf32>, vector<2x128xf32>, vector<1x128xf32> -> vector<1x128xf32>
    %58 = arith.mulf %55, %17 : vector<32x128xf32>
    %59 = arith.truncf %58 : vector<32x128xf32> to vector<32x128xbf16>
    %cst_33 = arith.constant dense<0.000000e+00> : vector<128x128xf32>
    %60 = tpu.matmul %15, %59, %cst_33 {dimension_numbers = #tpu.dot_dimension_numbers<[0], [0], [1], [1], [0, 1, 1, 1], [], []>} : vector<32x128xbf16>, vector<32x128xbf16>, vector<128x128xf32> -> vector<128x128xf32>
    %c0_34 = arith.constant 0 : index
    %c0_35 = arith.constant 0 : index
    %61 = vector.load %arg8[%c0_34, %c0_35] : memref<128x128xf32, #tpu.memory_space<vmem>>, vector<128x128xf32>
    %62 = vector.broadcast %57 : vector<1x128xf32> to vector<128x128xf32>
    %63 = arith.mulf %61, %62 : vector<128x128xf32>
    %64 = arith.addf %63, %60 : vector<128x128xf32>
    %c0_36 = arith.constant 0 : index
    %c0_37 = arith.constant 0 : index
    %65 = vector.load %arg8[%c0_36, %c0_37] : memref<128x128xf32, #tpu.memory_space<vmem>>, vector<128x128xf32>
    tpu.vector_store %arg8[%c0_36, %c0_37], %64 {strides = array<i32>} : memref<128x128xf32, #tpu.memory_space<vmem>>, vector<128x128xf32>,
    %c1_i32 = arith.constant 1 : i32
    %66 = arith.cmpi eq, %arg0, %c1_i32 : i32
    %67 = arith.extui %66 : i1 to i32
    %c0_i32_38 = arith.constant 0 : i32
    %68 = arith.cmpi ne, %67, %c0_i32_38 : i32
    scf.if %68 {
      %c0_39 = arith.constant 0 : index
      %c0_40 = arith.constant 0 : index
      %69 = vector.load %arg12[%c0_39, %c0_40] : memref<1x2xf32, #tpu.memory_space<vmem>>, vector<1x2xf32>
      %70 = tpu.reciprocal %69 : vector<1x2xf32> -> vector<1x2xf32>
      %c0_41 = arith.constant 0 : index
      %c0_42 = arith.constant 0 : index
      %71 = vector.load %arg5[%c0_41, %c0_42] : memref<2x128xf32, #tpu.memory_space<vmem>>, vector<2x128xf32>
      %cst_43 = arith.constant dense<0.000000e+00> : vector<1x128xf32>
      %72 = tpu.matmul %70, %71, %cst_43 {dimension_numbers = #tpu.dot_dimension_numbers<[1], [0], [0], [1], [0, 0, 1, 1], [], []>} : vector<1x2xf32>, vector<2x128xf32>, vector<1x128xf32> -> vector<1x128xf32>
      %c0_44 = arith.constant 0 : index
      %c0_45 = arith.constant 0 : index
      %73 = vector.load %arg8[%c0_44, %c0_45] : memref<128x128xf32, #tpu.memory_space<vmem>>, vector<128x128xf32>
      %74 = vector.broadcast %72 : vector<1x128xf32> to vector<128x128xf32>
      %75 = arith.mulf %73, %74 : vector<128x128xf32>
      %c0_46 = arith.constant 0 : index
      %c0_47 = arith.constant 0 : index
      %76 = vector.load %arg8[%c0_46, %c0_47] : memref<128x128xf32, #tpu.memory_space<vmem>>, vector<128x128xf32>
      tpu.vector_store %arg8[%c0_46, %c0_47], %75 {strides = array<i32>} : memref<128x128xf32, #tpu.memory_space<vmem>>, vector<128x128xf32>,
    } else {
    }
    return
  }
  func.func @transform_0(%arg0: i32) -> (i32, i32) {
    %c0_i32 = arith.constant 0 : i32
    %c0_i32_0 = arith.constant 0 : i32
    %c0_i32_1 = arith.constant 0 : i32
    return %c0_i32, %c0_i32_0 : i32, i32
  }
  func.func @transform_1(%arg0: i32) -> (i32, i32) {
    %c0_i32 = arith.constant 0 : i32
    %c0_i32_0 = arith.constant 0 : i32
    %c0_i32_1 = arith.constant 0 : i32
    return %c0_i32, %c0_i32_0 : i32, i32
  }
  func.func @transform_2(%arg0: i32) -> (i32, i32) {
    %c0_i32 = arith.constant 0 : i32
    %c0_i32_0 = arith.constant 0 : i32
    %c0_i32_1 = arith.constant 0 : i32
    return %c0_i32, %c0_i32_0 : i32, i32
  }
  func.func @transform_3(%arg0: i32) -> (i32, i32) {
    %c0_i32 = arith.constant 0 : i32
    %c0_i32_0 = arith.constant 0 : i32
    %c0_i32_1 = arith.constant 0 : i32
    return %c0_i32, %c0_i32_0 : i32, i32
  }
  func.func @transform_4(%arg0: i32) -> (i32, i32) {
    %c0_i32 = arith.constant 0 : i32
    %c0_i32_0 = arith.constant 0 : i32
    %c0_i32_1 = arith.constant 0 : i32
    return %c0_i32, %c0_i32_0 : i32, i32
  }
  func.func @transform_5(%arg0: i32) -> (i32, i32) {
    %c0_i32 = arith.constant 0 : i32
    %c0_i32_0 = arith.constant 0 : i32
    return %arg0, %c0_i32 : i32, i32
  }
  func.func @transform_6(%arg0: i32) -> (i32, i32) {
    %c0_i32 = arith.constant 0 : i32
    %c0_i32_0 = arith.constant 0 : i32
    return %arg0, %c0_i32 : i32, i32
  }
  func.func @transform_7(%arg0: i32) -> (i32, i32) {
    %c0_i32 = arith.constant 0 : i32
    %c0_i32_0 = arith.constant 0 : i32
    %c0_i32_1 = arith.constant 0 : i32
    return %c0_i32, %c0_i32_0 : i32, i32
  }
}

</mosaic_0001>

<bundles_post_ra>
// kernel: tpu_custom_call.1
= control target key start
LH: loop header
LB: loop body
LE: loop exit
PB: predicated region body
PF: predicated region fallthrough
CT: control target
= control target key end

     0   :  { %12 = vsyncpa [#allocation8], 0  ;;  %s2258_s24 = smov 0   ;;  %s2572_s0 = inlined_call_operand.vmem [shape: f32[128,8], index: 0, kind: input, shape index: {}]   ;;  %s2573_s1 = inlined_call_operand.vmem [shape: f32[8,128], index: 1, kind: input, shape index: {}]   ;;  %s2574_s2 = inlined_call_operand.vmem [shape: f32[128,2], index: 2, kind: input, shape index: {}]   ;;  %s2575_s3 = inlined_call_operand.vmem [shape: f32[128,2], index: 3, kind: input, shape index: {}]   ;;  %s2576_s4 = inlined_call_operand.vmem [shape: f32[2,128], index: 4, kind: input, shape index: {}]   ;;  %s2577_s5 = inlined_call_operand.vmem [shape: s32[64,1], index: 5, kind: input, shape index: {}]   ;;  %s2578_s6 = inlined_call_operand.vmem [shape: s32[64,1], index: 6, kind: input, shape index: {}]   ;;  %s2579_s7 = inlined_call_operand.hbm [shape: f32[128,128], index: 7, kind: output, shape index: {}]  }
   0x1 LB: > { %s2264_s25 = sadd.s32 4294967295, %s2205_s24   ;;  %p1683_p0 = scmp.ge.s32.totalorder %s2205_s24, 1  ;;  %s2205_s24 = sphi %s2258_s24, %s18_s24  }
   0x2   : > { %p245_p1 = scmp.lt.s32.totalorder %s2205_s24, 3 }
   0x4   : > { %p246_p2 = pnand %p1683_p0, %p245_p1 }
   0x5   : > { %s1684_s26 = sshll.u32 (!%p246_p2), %s2264_s25, 2  ;;  %p1688_p4 = scmp.ne.s32.totalorder (!%p246_p2), %s2264_s25, 0 }
   0x6   : > { %249 = sbr.rel (%p246_p2) target bundleno = 1788 (0x6fc), region = 48  ;;  %p278_p3 = scmp.lt.s32.totalorder (!%p246_p2), %s1684_s26, 7 }
   0xd   : > { %s2581_s26 = smov (!%p278_p3, %s1684_s26), 7  ;;  %293 = sbr.rel (%p1688_p4) target bundleno = 475 (0x1db), region = 52 }
   0xe   : > { %s1685_s27 = sshll.u32 %s2581_s26, 3  ;;  %v310_v0 = vld [vmem:[%s2573_s1] sm:$0xff] (!%p1688_p4)  ;;  %vm311_vm0 = vcmask (!%p1688_p4), 64512   ;;  %v295_v2 = vld [vmem:[%s2572_s0 + $0x8] sm:$0xff] (!%p1688_p4)  ;;  %v296_v3 = vld [vmem:[%s2572_s0 + $0x10] sm:$0xff] (!%p1688_p4)  ;;  %vm699_vm1 = vcmask (!%p1688_p4), 8192  }
   0xf   : > { %s2272_s30 = scalar_lea.vmem %s2577_s5, %s1685_s27  ;;  %s2277_s10 = scalar_lea.vmem %s2578_s6, %s1685_s27  ;;  %v294_v1 = vld [vmem:[%s2572_s0] sm:$0xff] (!%p1688_p4)  ;;  %1852 = vmatprep.subr.mxu0 (!%p1688_p4), %v310_v0  ;;  %v297_v4 = vld [vmem:[%s2572_s0 + $0x18] sm:$0xff] (!%p1688_p4)  ;;  %v522_v7 = vld [vmem:[%s2574_s2 + $0x8] sm:$0xff] (!%p1688_p4)  ;;  %vm690_vm2 = vcmask (!%p1688_p4), 15360  }
  0x10   : > { %1854 = vmatprep.mubr.msk.f32.mxu0 (!%p1688_p4), %vm311_vm0, %v294_v1  ;;  %1853 = vmatpush3.msra.mxu0 (!%p1688_p4), %v310_v0  ;;  %v298_v5 = vld [vmem:[%s2572_s0 + $0x20] sm:$0xff] (!%p1688_p4)  ;;  %v523_v8 = vld [vmem:[%s2574_s2 + $0x10] sm:$0xff] (!%p1688_p4)  ;;  %v524_v9 = vld [vmem:[%s2574_s2 + $0x18] sm:$0xff] (!%p1688_p4)  ;;  %v718_v1 = vlaneseq (!%p1688_p4) }
  0x11   : > { %1855 = vmatmul.mubr.msk.f32.vlgmr.msra.gmra.mrb[0].mxu0 (!%p1688_p4), %vm311_vm0, %v295_v2  ;;  %v521_v6 = vld [vmem:[%s2574_s2] sm:$0xff] (!%p1688_p4)  ;;  %v2054_v11 = vpack.c.bf16 (!%p1688_p4), %v524_v9, %v523_v8  ;;  %v299_v12 = vld [vmem:[%s2572_s0 + $0x28] sm:$0xff] (!%p1688_p4)  ;;  %v300_v15 = vld [vmem:[%s2572_s0 + $0x30] sm:$0xff] (!%p1688_p4) }
  0x12   : > { %1857 = vmatprep.mubr.msk.f32.mxu0 (!%p1688_p4), %vm311_vm0, %v296_v3  ;;  %v2050_v10 = vpack.c.bf16 (!%p1688_p4), %v522_v7, %v521_v6  ;;  %v525_v13 = vld [vmem:[%s2574_s2 + $0x20] sm:$0xff] (!%p1688_p4)  ;;  %v526_v14 = vld [vmem:[%s2574_s2 + $0x28] sm:$0xff] (!%p1688_p4)  ;;  %v301_v17 = vld [vmem:[%s2572_s0 + $0x38] sm:$0xff] (!%p1688_p4)  ;;  %v719_v2 = vand.u32 (!%p1688_p4), 127, %v718_v1  ;;  %v2207_v3 = vmov (!%p1688_p4), -1e+30  }
  0x13   : > { %v2058_v16 = vpack.c.bf16 (!%p1688_p4), %v526_v14, %v525_v13  ;;  %v527_v18 = vld [vmem:[%s2574_s2 + $0x30] sm:$0xff] (!%p1688_p4)  ;;  %v528_v19 = vld [vmem:[%s2574_s2 + $0x38] sm:$0xff] (!%p1688_p4)  ;;  %v302_v20 = vld [vmem:[%s2572_s0 + $0x40] sm:$0xff] (!%p1688_p4)  ;;  %700 = vst.msk [vmem:[#allocation4] sm:$0x1] (!%p1688_p4), %vm699_vm1, %v2207_v3 }
  0x14   : > { %2051 = vmatprep.subr.bf16.mxu0 %v2050_v10  ;;  %2114 = vmatprep.subr.bf16.mxu1 %v2050_v10  ;;  %v2062_v21 = vpack.c.bf16 %v528_v19, %v527_v18  ;;  %v303_v22 = vld [vmem:[%s2572_s0 + $0x48] sm:$0xff]  ;;  %v529_v23 = vld [vmem:[%s2574_s2 + $0x40] sm:$0xff]  ;;  %v304_v25 = vld [vmem:[%s2572_s0 + $0x50] sm:$0xff]  ;;  %720 = vst [vmem:[#allocation6] sm:$0xff] %v719_v2 }
  0x15   : > { %1858 = vmatmul.mubr.msk.f32.gmra.mrb[2].mxu0 %vm311_vm0, %v297_v4  ;;  %2122 = vmatpush3.bf16.msra.mxu1 %v2050_v10  ;;  %v530_v24 = vld [vmem:[%s2574_s2 + $0x48] sm:$0xff]  ;;  %v305_v27 = vld [vmem:[%s2572_s0 + $0x58] sm:$0xff]  ;;  %v531_v28 = vld [vmem:[%s2574_s2 + $0x50] sm:$0xff]  ;;  %v2208_v4 = vmov 0.0   ;;  %721 = vst [vmem:[#allocation6 + $0x8] sm:$0xff] %v719_v2 }
  0x16   : > { %1860 = vmatprep.mubr.msk.f32.mxu0 %vm311_vm0, %v298_v5  ;;  %2053 = vmatpush3.bf16.msra.mxu0 %v2050_v10  ;;  %v2066_v26 = vpack.c.bf16 %v530_v24, %v529_v23  ;;  %v532_v29 = vld [vmem:[%s2574_s2 + $0x58] sm:$0xff]  ;;  %v306_v30 = vld [vmem:[%s2572_s0 + $0x60] sm:$0xff]  ;;  %v307_v32 = vld [vmem:[%s2572_s0 + $0x68] sm:$0xff]  ;;  %701 = vst.msk [vmem:[#allocation5] sm:$0x1] %vm699_vm1, %v2208_v4 }
  0x17   : > { %2055 = vmatprep.subr.bf16.mxu0 %v2054_v11  ;;  %2115 = vmatprep.subr.bf16.mxu1 %v2054_v11  ;;  %v2070_v31 = vpack.c.bf16 %v532_v29, %v531_v28  ;;  %v533_v33 = vld [vmem:[%s2574_s2 + $0x60] sm:$0xff]  ;;  %v534_v34 = vld [vmem:[%s2574_s2 + $0x68] sm:$0xff]  ;;  %v308_v35 = vld [vmem:[%s2572_s0 + $0x70] sm:$0xff]  ;;  %702 = vst [vmem:[#allocation7] sm:$0xff] %v2208_v4 }
  0x18   : > { %v2074_v36 = vpack.c.bf16 %v534_v34, %v533_v33  ;;  %v309_v37 = vld [vmem:[%s2572_s0 + $0x78] sm:$0xff]  ;;  %v535_v38 = vld [vmem:[%s2574_s2 + $0x70] sm:$0xff]  ;;  %703 = vst [vmem:[#allocation7 + $0x8] sm:$0xff] %v2208_v4  ;;  %704 = vst [vmem:[#allocation7 + $0x10] sm:$0xff] %v2208_v4 }
  0x19   : > { %1861 = vmatmul.mubr.msk.f32.gmra.mrb[4].mxu0 %vm311_vm0, %v299_v12  ;;  %2123 = vmatpush3.bf16.msra.mxu1 %v2054_v11  ;;  %v536_v39 = vld [vmem:[%s2574_s2 + $0x78] sm:$0xff]  ;;  %705 = vst [vmem:[#allocation7 + $0x18] sm:$0xff] %v2208_v4  ;;  %706 = vst [vmem:[#allocation7 + $0x20] sm:$0xff] %v2208_v4 }
  0x1a   : > { %1863 = vmatprep.mubr.msk.f32.mxu0 %vm311_vm0, %v300_v15  ;;  %2057 = vmatpush3.bf16.msra.mxu0 %v2054_v11  ;;  %v2078_v40 = vpack.c.bf16 %v536_v39, %v535_v38  ;;  %707 = vst [vmem:[#allocation7 + $0x28] sm:$0xff] %v2208_v4  ;;  %708 = vst [vmem:[#allocation7 + $0x30] sm:$0xff] %v2208_v4 }
  0x1b   : > { %2059 = vmatprep.subr.bf16.mxu0 %v2058_v16  ;;  %2116 = vmatprep.subr.bf16.mxu1 %v2058_v16  ;;  %709 = vst [vmem:[#allocation7 + $0x38] sm:$0xff] %v2208_v4  ;;  %710 = vst [vmem:[#allocation7 + $0x40] sm:$0xff] %v2208_v4 }
  0x1c   : > { %711 = vst [vmem:[#allocation7 + $0x48] sm:$0xff] %v2208_v4  ;;  %712 = vst [vmem:[#allocation7 + $0x50] sm:$0xff] %v2208_v4 }
  0x1d   : > { %1864 = vmatmul.mubr.msk.f32.gmra.mrb[6].mxu0 %vm311_vm0, %v301_v17  ;;  %2124 = vmatpush3.bf16.msra.mxu1 %v2058_v16  ;;  %713 = vst [vmem:[#allocation7 + $0x58] sm:$0xff] %v2208_v4  ;;  %714 = vst [vmem:[#allocation7 + $0x60] sm:$0xff] %v2208_v4 }
  0x1e   : > { %1866 = vmatprep.mubr.msk.f32.mxu0 %vm311_vm0, %v302_v20  ;;  %2061 = vmatpush3.bf16.msra.mxu0 %v2058_v16  ;;  %715 = vst [vmem:[#allocation7 + $0x68] sm:$0xff] %v2208_v4  ;;  %716 = vst [vmem:[#allocation7 + $0x70] sm:$0xff] %v2208_v4 }
  0x1f   : > { %2063 = vmatprep.subr.bf16.mxu0 %v2062_v21  ;;  %2117 = vmatprep.subr.bf16.mxu1 %v2062_v21  ;;  %717 = vst [vmem:[#allocation7 + $0x78] sm:$0xff] %v2208_v4  ;;  %722 = vst [vmem:[#allocation6 + $0x10] sm:$0xff] %v719_v2 }
  0x20   : > { %723 = vst [vmem:[#allocation6 + $0x18] sm:$0xff] %v719_v2 }
  0x21   : > { %1867 = vmatmul.mubr.msk.f32.gmra.mrb[8].mxu0 %vm311_vm0, %v303_v22  ;;  %2125 = vmatpush3.bf16.msra.mxu1 %v2062_v21 }
  0x22   : > { %1869 = vmatprep.mubr.msk.f32.mxu0 %vm311_vm0, %v304_v25  ;;  %2065 = vmatpush3.bf16.msra.mxu0 %v2062_v21 }
  0x23   : > { %2067 = vmatprep.subr.bf16.mxu0 %v2066_v26  ;;  %2118 = vmatprep.subr.bf16.mxu1 %v2066_v26 }
  0x25   : > { %1870 = vmatmul.mubr.msk.f32.gmra.mrb[10].mxu0 %vm311_vm0, %v305_v27  ;;  %2126 = vmatpush3.bf16.msra.mxu1 %v2066_v26 }
  0x26   : > { %1872 = vmatprep.mubr.msk.f32.mxu0 %vm311_vm0, %v306_v30  ;;  %2069 = vmatpush3.bf16.msra.mxu0 %v2066_v26 }
  0x27   : > { %2071 = vmatprep.subr.bf16.mxu0 %v2070_v31  ;;  %2119 = vmatprep.subr.bf16.mxu1 %v2070_v31 }
  0x29   : > { %1873 = vmatmul.mubr.msk.f32.gmra.mrb[12].mxu0 %vm311_vm0, %v307_v32  ;;  %2127 = vmatpush3.bf16.msra.mxu1 %v2070_v31 }
  0x2a   : > { %1875 = vmatprep.mubr.msk.f32.mxu0 %vm311_vm0, %v308_v35  ;;  %2073 = vmatpush3.bf16.msra.mxu0 %v2070_v31 }
  0x2b   : > { %2075 = vmatprep.subr.bf16.mxu0 %v2074_v36  ;;  %2120 = vmatprep.subr.bf16.mxu1 %v2074_v36 }
  0x2d   : > { %1876 = vmatmul.mubr.msk.f32.gmra.mrb[14].mxu0 %vm311_vm0, %v309_v37  ;;  %2128 = vmatpush3.bf16.msra.mxu1 %v2074_v36 }
  0x2e   : > { %2077 = vmatpush3.bf16.msra.mxu0 %v2074_v36  ;;  %2121 = vmatprep.subr.bf16.mxu1 %v2078_v40 }
  0x2f   : > { %2079 = vmatprep.subr.bf16.mxu0 %v2078_v40 }
  0x31   : > { %2129 = vmatpush3.bf16.msra.mxu1 %v2078_v40 }
  0x32   : > { %2081 = vmatpush3.bf16.msra.mxu0 %v2078_v40 }
  0xe4   : > { %v1856_v41 = vpop.f32.mrb[0].mxu0 }
  0xe5   : > { %v426_v42 = vpop.f32.mrb[1].mxu0 }
  0xe6   : > { %v505_v43 = vpack.c.bf16 %v1856_v41, %v426_v42  ;;  %1910 = vmatprep.mubr.f32.mxu0 %v426_v42 }
  0xe7   : > { %1911 = vmatmul.mubr.f32.vlgmr.msra.gmra.mrb[16].mxu0 %v1856_v41 }
  0xe8   : > { %513 = vst [vmem:[#allocation2] sm:$0xff] %v505_v43  ;;  %v1859_v44 = vpop.f32.mrb[2].mxu0 }
  0xe9   : > { %v436_v45 = vpop.f32.mrb[3].mxu0 }
  0xea   : > { %v506_v46 = vpack.c.bf16 %v1859_v44, %v436_v45  ;;  %1913 = vmatprep.mubr.f32.mxu0 %v436_v45 }
  0xeb   : > { %1914 = vmatmul.mubr.f32.gmra.mrb[18].mxu0 %v1859_v44 }
  0xec   : > { %514 = vst [vmem:[#allocation2 + $0x8] sm:$0xff] %v506_v46  ;;  %v1862_v47 = vpop.f32.mrb[4].mxu0 }
  0xed   : > { %v446_v48 = vpop.f32.mrb[5].mxu0 }
  0xee   : > { %v507_v49 = vpack.c.bf16 %v1862_v47, %v446_v48  ;;  %1916 = vmatprep.mubr.f32.mxu0 %v446_v48 }
  0xef   : > { %1917 = vmatmul.mubr.f32.gmra.mrb[20].mxu0 %v1862_v47 }
  0xf0   : > { %515 = vst [vmem:[#allocation2 + $0x10] sm:$0xff] %v507_v49  ;;  %v1865_v50 = vpop.f32.mrb[6].mxu0 }
  0xf1   : > { %v456_v51 = vpop.f32.mrb[7].mxu0 }
  0xf2   : > { %v508_v52 = vpack.c.bf16 %v1865_v50, %v456_v51  ;;  %1919 = vmatprep.mubr.f32.mxu1 %v456_v51 }
  0xf3   : > { %1920 = vmatmul.mubr.f32.vlgmr.msra.gmra.mrb[0].mxu1 %v1865_v50 }
  0xf4   : > { %516 = vst [vmem:[#allocation2 + $0x18] sm:$0xff] %v508_v52  ;;  %v1868_v53 = vpop.f32.mrb[8].mxu0 }
  0xf5   : > { %v466_v54 = vpop.f32.mrb[9].mxu0 }
  0xf6   : > { %v509_v55 = vpack.c.bf16 %v1868_v53, %v466_v54  ;;  %1922 = vmatprep.mubr.f32.mxu1 %v466_v54 }
  0xf7   : > { %1923 = vmatmul.mubr.f32.gmra.mrb[2].mxu1 %v1868_v53 }
  0xf8   : > { %517 = vst [vmem:[#allocation2 + $0x20] sm:$0xff] %v509_v55  ;;  %v1871_v56 = vpop.f32.mrb[10].mxu0 }
  0xf9   : > { %v476_v57 = vpop.f32.mrb[11].mxu0 }
  0xfa   : > { %v510_v58 = vpack.c.bf16 %v1871_v56, %v476_v57  ;;  %1925 = vmatprep.mubr.f32.mxu1 %v476_v57 }
  0xfb   : > { %1926 = vmatmul.mubr.f32.gmra.mrb[4].mxu1 %v1871_v56 }
  0xfc   : > { %518 = vst [vmem:[#allocation2 + $0x28] sm:$0xff] %v510_v58  ;;  %v1874_v59 = vpop.f32.mrb[12].mxu0 }
  0xfd   : > { %v486_v60 = vpop.f32.mrb[13].mxu0 }
  0xfe   : > { %v511_v61 = vpack.c.bf16 %v1874_v59, %v486_v60  ;;  %1928 = vmatprep.mubr.f32.mxu1 %v486_v60 }
  0xff   : > { %1929 = vmatmul.mubr.f32.gmra.mrb[6].mxu1 %v1874_v59 }
 0x100   : > { %519 = vst [vmem:[#allocation2 + $0x30] sm:$0xff] %v511_v61  ;;  %v1877_v62 = vpop.f32.mrb[14].mxu0 }
 0x101   : > { %v496_v63 = vpop.f32.mrb[15].mxu0 }
 0x102   : > { %v512_v0 = vpack.c.bf16 %v1877_v62, %v496_v63  ;;  %1931 = vmatprep.mubr.f32.mxu1 %v496_v63 }
 0x103   : > { %1932 = vmatmul.mubr.f32.gmra.mrb[8].mxu1 %v1877_v62 }
 0x104   : > { %520 = vst [vmem:[#allocation2 + $0x38] sm:$0xff] %v512_v0 }
 0x1ba   : > { %v1912_v5 = vpop.f32.mrb[16].mxu0 }
 0x1bb   : > { %v603_v6 = vpop.f32.mrb[17].mxu0 }
 0x1bc   : > { %v682_v7 = vpack.c.bf16 %v1912_v5, %v603_v6 }
 0x1be   : > { %691 = vst.msk [vmem:[#allocation3] sm:$0xff] %vm690_vm2, %v682_v7  ;;  %v1915_v8 = vpop.f32.mrb[18].mxu0 }
 0x1bf   : > { %v613_v9 = vpop.f32.mrb[19].mxu0 }
 0x1c0   : > { %v683_v10 = vpack.c.bf16 %v1915_v8, %v613_v9 }
 0x1c2   : > { %692 = vst.msk [vmem:[#allocation3 + $0x8] sm:$0xff] %vm690_vm2, %v683_v10  ;;  %v1918_v11 = vpop.f32.mrb[20].mxu0 }
 0x1c3   : > { %v623_v12 = vpop.f32.mrb[21].mxu0 }
 0x1c4   : > { %v684_v13 = vpack.c.bf16 %v1918_v11, %v623_v12 }
 0x1c6   : > { %693 = vst.msk [vmem:[#allocation3 + $0x10] sm:$0xff] %vm690_vm2, %v684_v13  ;;  %v1921_v14 = vpop.f32.mrb[0].mxu1 }
 0x1c7   : > { %v633_v15 = vpop.f32.mrb[1].mxu1 }
 0x1c8   : > { %v685_v16 = vpack.c.bf16 %v1921_v14, %v633_v15 }
 0x1ca   : > { %694 = vst.msk [vmem:[#allocation3 + $0x18] sm:$0xff] %vm690_vm2, %v685_v16  ;;  %v1924_v17 = vpop.f32.mrb[2].mxu1 }
 0x1cb   : > { %v643_v18 = vpop.f32.mrb[3].mxu1 }
 0x1cc   : > { %v686_v19 = vpack.c.bf16 %v1924_v17, %v643_v18 }
 0x1ce   : > { %695 = vst.msk [vmem:[#allocation3 + $0x20] sm:$0xff] %vm690_vm2, %v686_v19  ;;  %v1927_v20 = vpop.f32.mrb[4].mxu1 }
 0x1cf   : > { %v653_v21 = vpop.f32.mrb[5].mxu1 }
 0x1d0   : > { %v687_v22 = vpack.c.bf16 %v1927_v20, %v653_v21 }
 0x1d2   : > { %696 = vst.msk [vmem:[#allocation3 + $0x28] sm:$0xff] %vm690_vm2, %v687_v22  ;;  %v1930_v23 = vpop.f32.mrb[6].mxu1 }
 0x1d3   : > { %v663_v24 = vpop.f32.mrb[7].mxu1 }
 0x1d4   : > { %v688_v25 = vpack.c.bf16 %v1930_v23, %v663_v24 }
 0x1d6   : > { %697 = vst.msk [vmem:[#allocation3 + $0x30] sm:$0xff] %vm690_vm2, %v688_v25  ;;  %v1933_v26 = vpop.f32.mrb[8].mxu1 }
 0x1d7   : > { %v673_v27 = vpop.f32.mrb[9].mxu1 }
 0x1d8   : > { %v689_v28 = vpack.c.bf16 %v1933_v26, %v673_v27 }
 0x1da   : > { %698 = vst.msk [vmem:[#allocation3 + $0x38] sm:$0xff] %vm690_vm2, %v689_v28 }
 0x1db PF: > { %v760_v29 = vld [vmem:[%s2277_s10 + $0x10] sm:$0xff]  ;;  %v758_v30 = vld [vmem:[%s2277_s10] sm:$0xff]  ;;  %v2209_v31 = vmov 0   ;;  %v761_v33 = vld [vmem:[%s2277_s10 + $0x18] sm:$0xff]  ;;  %v2210_v12 = vmov 0.0   ;;  %vm1111_vm15 = vcmask 1041408  }
 0x1dc   : > { %2156 = vset.pattern.permute.xlu1 %v2209_v31  ;;  %2155 = vset.pattern.permute.xlu0 %v2209_v31  ;;  %v788_v32 = vld [vmem:[#allocation2] sm:$0xff]  ;;  %v759_v34 = vld [vmem:[%s2277_s10 + $0x8] sm:$0xff]  ;;  %v790_v36 = vld [vmem:[#allocation2 + $0x10] sm:$0xff]  ;;  %v2211_v17 = vmov 1.0|1.0   ;;  %vm2212_vm0 = vmmov 0  }
 0x1dd   : > { %769 = vperm.xlu1 %2156, %v760_v29   ;;  %763 = vperm.xlu0 %2155, %v758_v30   ;;  %v789_v35 = vld [vmem:[#allocation2 + $0x8] sm:$0xff]  ;;  %v728_v38 = vld [vmem:[%s2272_s30] sm:$0xff]  ;;  %v791_v39 = vld [vmem:[#allocation2 + $0x18] sm:$0xff]  ;;  %s1721_s12 = sshll.u32 %s2264_s25, 5  ;;  %p1737_p5 = scmp.ne.s32.totalorder %s2264_s25, 1 }
 0x1de   : > { %1934 = vmatprep.subr.bf16.mxu0 %v788_v32  ;;  %v729_v37 = vld [vmem:[%s2272_s30 + $0x8] sm:$0xff]  ;;  %v731_v40 = vld [vmem:[%s2272_s30 + $0x18] sm:$0xff]  ;;  %v730_v41 = vld [vmem:[%s2272_s30 + $0x10] sm:$0xff] }
 0x1df   : > { %1935 = vmatpush3.bf16.msra.mxu0 %v788_v32  ;;  %v792_v42 = vld [vmem:[#allocation2 + $0x20] sm:$0xff]  ;;  %v793_v43 = vld [vmem:[#allocation2 + $0x28] sm:$0xff]  ;;  %v794_v44 = vld [vmem:[#allocation2 + $0x30] sm:$0xff] }
 0x1e0   : > { %1936 = vmatprep.subr.bf16.mxu0 %v789_v35  ;;  %v795_v45 = vld [vmem:[#allocation2 + $0x38] sm:$0xff]  ;;  %v2411_v46 = vld [vmem:[#allocation3] sm:$0xff]  ;;  %v854_v48 = vld [vmem:[%s2575_s3 + $0x8] sm:$0xff] }
 0x1e1   : > { %772 = vperm.xlu1 %2156, %v761_v33   ;;  %766 = vperm.xlu0 %2155, %v759_v34   ;;  %v853_v47 = vld [vmem:[%s2575_s3] sm:$0xff]  ;;  %v855_v49 = vld [vmem:[%s2575_s3 + $0x10] sm:$0xff]  ;;  %v856_v51 = vld [vmem:[%s2575_s3 + $0x18] sm:$0xff] }
 0x1e2   : > { %v2082_v50 = vpack.c.bf16 %v854_v48, %v853_v47  ;;  %v2086_v52 = vpack.c.bf16 %v856_v51, %v855_v49  ;;  %v857_v53 = vld [vmem:[%s2575_s3 + $0x20] sm:$0xff]  ;;  %v858_v54 = vld [vmem:[%s2575_s3 + $0x28] sm:$0xff]  ;;  %v859_v56 = vld [vmem:[%s2575_s3 + $0x30] sm:$0xff] }
 0x1e3   : > { %1937 = vmatpush3.bf16.msra.mxu0 %v789_v35  ;;  %v2090_v55 = vpack.c.bf16 %v858_v54, %v857_v53  ;;  %v860_v57 = vld [vmem:[%s2575_s3 + $0x38] sm:$0xff]  ;;  %v861_v59 = vld [vmem:[%s2575_s3 + $0x40] sm:$0xff]  ;;  %v862_v60 = vld [vmem:[%s2575_s3 + $0x48] sm:$0xff] }
 0x1e4   : > { %1938 = vmatprep.subr.bf16.mxu0 %v790_v36  ;;  %2083 = vmatprep.subr.bf16.mxu1 %v2082_v50  ;;  %v2094_v58 = vpack.c.bf16 %v860_v57, %v859_v56  ;;  %v2098_v61 = vpack.c.bf16 %v862_v60, %v861_v59  ;;  %v863_v62 = vld [vmem:[%s2575_s3 + $0x50] sm:$0xff]  ;;  %v864_v63 = vld [vmem:[%s2575_s3 + $0x58] sm:$0xff]  ;;  %v865_v1 = vld [vmem:[%s2575_s3 + $0x60] sm:$0xff] }
 0x1e5   : > { %736 = vperm.xlu1 %2156, %v729_v37   ;;  %733 = vperm.xlu0 %2155, %v728_v38   ;;  %v2102_v0 = vpack.c.bf16 %v864_v63, %v863_v62  ;;  %v866_v2 = vld [vmem:[%s2575_s3 + $0x68] sm:$0xff]  ;;  %v726_v7 = vld [vmem:[#allocation6 + $0x10] sm:$0xff]  ;;  %v727_v8 = vld [vmem:[#allocation6 + $0x18] sm:$0xff] }
 0x1e6   : > { %2085 = vmatpush3.bf16.msra.mxu1 %v2082_v50  ;;  %v2106_v3 = vpack.c.bf16 %v866_v2, %v865_v1  ;;  %v724_v6 = vld [vmem:[#allocation6] sm:$0xff]  ;;  %v725_v9 = vld [vmem:[#allocation6 + $0x8] sm:$0xff]  ;;  %v848_v24 = vld [vmem:[#allocation3 + $0x18] sm:$0xff] }
 0x1e7   : > { %1939 = vmatpush3.bf16.msra.mxu0 %v790_v36  ;;  %2087 = vmatprep.subr.bf16.mxu1 %v2086_v52  ;;  %v846_v20 = vld [vmem:[#allocation3 + $0x8] sm:$0xff]  ;;  %v847_v23 = vld [vmem:[#allocation3 + $0x10] sm:$0xff]  ;;  %v849_v25 = vld [vmem:[#allocation3 + $0x20] sm:$0xff] }
 0x1e8   : > { %1940 = vmatprep.subr.bf16.mxu0 %v791_v39  ;;  %v850_v26 = vld [vmem:[#allocation3 + $0x28] sm:$0xff]  ;;  %v851_v27 = vld [vmem:[#allocation3 + $0x30] sm:$0xff]  ;;  %v852_v28 = vld [vmem:[#allocation3 + $0x38] sm:$0xff] }
 0x1e9   : > { %742 = vperm.xlu1 %2156, %v731_v40   ;;  %739 = vperm.xlu0 %2155, %v730_v41   ;;  %v867_v31 = vld [vmem:[%s2575_s3 + $0x70] sm:$0xff]  ;;  %v868_v32 = vld [vmem:[%s2575_s3 + $0x78] sm:$0xff] }
 0x1ea   : > { %2089 = vmatpush3.bf16.msra.mxu1 %v2086_v52  ;;  %v2110_v33 = vpack.c.bf16 %v868_v32, %v867_v31 }
 0x1eb   : > { %1941 = vmatpush3.bf16.msra.mxu0 %v791_v39  ;;  %2091 = vmatprep.subr.bf16.mxu1 %v2090_v55 }
 0x1ec   : > { %1942 = vmatprep.subr.bf16.mxu0 %v792_v42 }
 0x1ee   : > { %2093 = vmatpush3.bf16.msra.mxu1 %v2090_v55 }
 0x1ef   : > { %1943 = vmatpush3.bf16.msra.mxu0 %v792_v42  ;;  %2095 = vmatprep.subr.bf16.mxu1 %v2094_v58  ;;  %v1098_v42 = vld [vmem:[%s2576_s4] sm:$0x3] }
 0x1f0   : > { %1944 = vmatprep.subr.bf16.mxu0 %v793_v43 }
 0x1f2   : > { %2097 = vmatpush3.bf16.msra.mxu1 %v2094_v58 }
 0x1f3   : > { %1945 = vmatpush3.bf16.msra.mxu0 %v793_v43  ;;  %2099 = vmatprep.subr.bf16.mxu1 %v2098_v61  ;;  %v1015_v43 = vlaneseq }
 0x1f4   : > { %1946 = vmatprep.subr.bf16.mxu0 %v794_v44 }
 0x1f6   : > { %2101 = vmatpush3.bf16.msra.mxu1 %v2098_v61 }
 0x1f7   : > { %1947 = vmatpush3.bf16.msra.mxu0 %v794_v44  ;;  %2103 = vmatprep.subr.bf16.mxu1 %v2102_v0  ;;  %v1016_v44 = vshrl.u32 %v1015_v43, 7 }
 0x1f8   : > { %1948 = vmatprep.subr.bf16.mxu0 %v795_v45 }
 0x1f9   : > { %v1019_v47 = vadd.s32 24, %v1016_v44  ;;  %v1018_v51 = vadd.s32 16, %v1016_v44 }
 0x1fa   : > { %2105 = vmatpush3.bf16.msra.mxu1 %v2102_v0 }
 0x1fb   : > { %1949 = vmatpush3.bf16.msra.mxu0 %v795_v45  ;;  %2107 = vmatprep.subr.bf16.mxu1 %v2106_v3  ;;  %v1017_v45 = vadd.s32 8, %v1016_v44 }
 0x1fc   : > { %1992 = vmatprep.subr.bf16.mxu0 %v2411_v46 }
 0x1fe   : > { %2109 = vmatpush3.bf16.msra.mxu1 %v2106_v3 }
 0x1ff   : > { %2111 = vmatprep.subr.bf16.mxu1 %v2110_v33 }
 0x202   : > { %2113 = vmatpush3.bf16.msra.mxu1 %v2110_v33 }
 0x203   : > { %2020 = vmatprep.subr.mxu1 %v2210_v12 }
 0x25c   : > { %v770_v4 = vpop.permute.xlu1 %769  ;;  %v764_v5 = vpop.permute.xlu0 %763 }
 0x25d   : > { %vm774_vm3 = vcmp.eq.s32.totalorder %v764_v5, %v724_v6  ;;  %vm776_vm4 = vcmp.eq.s32.totalorder %v770_v4, %v726_v7 }
 0x25e   : > { %v1709_v13 = vsel %vm774_vm3, 1.0, %v2210_v12  ;;  %v1711_v21 = vsel %vm776_vm4, 1.0, %v2210_v12 }
 0x260   : > { %v773_v10 = vpop.permute.xlu1 %772  ;;  %v767_v11 = vpop.permute.xlu0 %766 }
 0x261   : > { %vm777_vm5 = vcmp.eq.s32.totalorder %v773_v10, %v727_v8  ;;  %vm775_vm6 = vcmp.eq.s32.totalorder %v767_v11, %v725_v9 }
 0x262   : > { %vm1715_vm7 = vmpackc.low %vm777_vm5, %vm776_vm4  ;;  %v1710_v14 = vsel %vm775_vm6, 1.0, %v2210_v12  ;;  %v1712_v16 = vsel %vm777_vm5, 1.0, %v2210_v12 }
 0x263   : > { %v786_v15 = vpack.c.bf16 %v1710_v14, %v1709_v13  ;;  %vm1713_vm8 = vmpackc.low %vm775_vm6, %vm774_vm3  ;;  %v787_v22 = vpack.c.bf16 %v1712_v16, %v1711_v21  ;;  %vm1043_vm3 = vcmask 15360   ;;  %v1042_v21 = vld [vmem:[#allocation4] sm:$0x1] }
 0x264   : > { %1950 = vmatprep.mubr.msk.bf16.mxu0 %vm1713_vm8, %v2211_v17  ;;  %v737_v18 = vpop.permute.xlu1 %736  ;;  %v734_v19 = vpop.permute.xlu0 %733 }
 0x265   : > { %vm745_vm9 = vcmp.eq.s32.totalorder %v737_v18, %v725_v9  ;;  %vm744_vm10 = vcmp.eq.s32.totalorder %v734_v19, %v724_v6  ;;  %1951 = vmatmul.mubr.msk.bf16.vlgmr.msra.gmra.mrb[0].mxu0 %vm1715_vm7, %v2211_v17  ;;  %1279 = vxpose.xlu0.c.b16.start [1/2] (short) %v786_v15, 128 }
 0x266   : > { %vm1717_vm11 = vmpackc.low %vm745_vm9, %vm744_vm10  ;;  %1993 = vmatpush3.bf16.msra.mxu0 %v2411_v46  ;;  %v1021_v46 = vstv %s1721_s12  ;;  %vm1095_vm10 = vcmask 8192  }
 0x267   : > { %1994 = vmatprep.subr.bf16.mxu0 %v846_v20  ;;  %2008 = vmatprep.mubr.msk.bf16.mxu0 %vm1717_vm11, %v2211_v17  ;;  %v1023_v48 = vadd.s32 %v1021_v46, %v1017_v45  ;;  %v1022_v50 = vadd.s32 %v1021_v46, %v1016_v44  ;;  %v1025_v55 = vadd.s32 %v1021_v46, %v1019_v47  ;;  %vm1295_vm11 = vcmask 261120  }
 0x268   : > { %v743_v29 = vpop.permute.xlu1 %742  ;;  %v740_v30 = vpop.permute.xlu0 %739  ;;  %v1024_v59 = vadd.s32 %v1021_v46, %v1018_v51 }
 0x269   : > { %1280 = vxpose.xlu0.c.b16.end [2/2] (short) %v787_v22, 128  ;;  %vm747_vm12 = vcmp.eq.s32.totalorder %v743_v29, %v727_v8  ;;  %vm746_vm13 = vcmp.eq.s32.totalorder %v740_v30, %v726_v7  ;;  %vm1027_vm2 = vcmp.lt.s32.totalorder %v1023_v48, 40  ;;  %vm1026_vm5 = vcmp.lt.s32.totalorder %v1022_v50, 40 }
 0x26a   : > { %1995 = vmatpush3.bf16.msra.mxu0 %v846_v20  ;;  %vm1719_vm14 = vmpackc.low %vm747_vm12, %vm746_vm13  ;;  %vm1029_vm6 = vcmp.lt.s32.totalorder %v1025_v55, 40  ;;  %vm1028_vm9 = vcmp.lt.s32.totalorder %v1024_v59, 40  ;;  %vm2214_vm12 = vmmov (!%p1737_p5), 0  }
 0x26b   : > { %1996 = vmatprep.subr.bf16.mxu0 %v847_v23 }
 0x26e   : > { %1997 = vmatpush3.bf16.msra.mxu0 %v847_v23  ;;  %v2494_v23 = vsub.s32 0, %v1016_v44 }
 0x26f   : > { %1998 = vmatprep.subr.bf16.mxu0 %v848_v24 }
 0x272   : > { %1999 = vmatpush3.bf16.msra.mxu0 %v848_v24 }
 0x273   : > { %2000 = vmatprep.subr.bf16.mxu0 %v849_v25 }
 0x276   : > { %2001 = vmatpush3.bf16.msra.mxu0 %v849_v25 }
 0x277   : > { %2002 = vmatprep.subr.bf16.mxu0 %v850_v26 }
 0x27a   : > { %2003 = vmatpush3.bf16.msra.mxu0 %v850_v26 }
 0x27b   : > { %2004 = vmatprep.subr.bf16.mxu0 %v851_v27 }
 0x27e   : > { %2005 = vmatpush3.bf16.msra.mxu0 %v851_v27 }
 0x27f   : > { %2006 = vmatprep.subr.bf16.mxu0 %v852_v28 }
 0x282   : > { %2007 = vmatpush3.bf16.msra.mxu0 %v852_v28 }
 0x283   : > { %2012 = vmatprep.subr.msk.mxu0 %vm1111_vm15, %v1098_v42 }
 0x285   : > { %2009 = vmatmul.mubr.msk.bf16.vlgmr.msra.gmra.mrb[4].mxu0 %vm1719_vm14, %v2211_v17 }
 0x286   : > { %2013 = vmatpush3.msk.msra.mxu0 %vm1111_vm15, %v1098_v42 }
 0x338   : > { %v2470_v34 = vpop.f32.mrb[0].mxu0 }
 0x339   : > { %v2472_v35 = vpop.f32.mrb[1].mxu0 }
 0x33a   : > { %v2474_v36 = vpop.f32.mrb[2].mxu0  ;;  %1986 = vmatprep.mubr.f32.mxu1 %v2472_v35 }
 0x33b   : > { %v2477_v37 = vpop.f32.mrb[3].mxu0 }
 0x33c   : > { %1987 = vmatmul.mubr.f32.vlgmr.msra.gmra.mrb[0].mxu1 %v2477_v37 }
 0x33d   : > { %1989 = vmatprep.mubr.f32.mxu1 %v2470_v34  ;;  %2021 = vmatpush3.msk.msra.mxu1 %vm1111_vm15, %v1098_v42 }
 0x340   : > { %1990 = vmatmul.mubr.f32.gmra.mrb[2].mxu1 %v2474_v36 }
 0x341   : > { %2022 = vmatprep.mubr.msk.f32.mxu1 %vm2212_vm0, %v2210_v12 }
 0x358   : > { %v2010_v38 = vpop.f32.mrb[4].mxu0 }
 0x359   : > { %v988_v39 = vpop.f32.mrb[5].mxu0 }
 0x35a   : > { %v2011_v40 = vpop.f32.mrb[6].mxu0 }
 0x35b   : > { %v991_v41 = vpop.f32.mrb[7].mxu0 }
 0x40f   : > { %v1988_v49 = vpop.f32.mrb[0].mxu1 }
 0x410   : > { %v992_v52 = vadd.f32 %v1988_v49, %v991_v41  ;;  %v935_v53 = vpop.f32.mrb[1].mxu1 }
 0x411   : > { %v989_v54 = vadd.f32 %v988_v39, %v935_v53 }
 0x412   : > { %vm1004_vm1 = vcmp.gt.f32.partialorder %v992_v52, 0.0  ;;  %v1008_v56 = vmul.f32 0.2, %v992_v52 }
 0x413   : > { %vm1003_vm4 = vcmp.gt.f32.partialorder %v989_v54, 0.0  ;;  %v1007_v57 = vmul.f32 0.2, %v989_v54  ;;  %v1991_v58 = vpop.f32.mrb[2].mxu1 }
 0x414   : > { %v1012_v60 = vsel %vm1004_vm1, %v992_v52, %v1008_v56  ;;  %v1000_v61 = vadd.f32 %v2011_v40, %v1991_v58  ;;  %v945_v62 = vpop.f32.mrb[3].mxu1  ;;  %v1079_v56 = vld [vmem:[#allocation5] sm:$0x1] }
 0x415   : > { %v1039_v63 = vsel %vm1027_vm2, %v1012_v60, -1e+30  ;;  %v1011_v0 = vsel %vm1003_vm4, %v989_v54, %v1007_v57  ;;  %v997_v1 = vadd.f32 %v2010_v38, %v945_v62 }
 0x416   : > { %v1045_v2 = vsel %vm1043_vm3, %v1039_v63, -inf  ;;  %v1038_v3 = vsel %vm1026_vm5, %v1011_v0, -1e+30  ;;  %vm1006_vm7 = vcmp.gt.f32.partialorder %v1000_v61, 0.0  ;;  %v1010_v4 = vmul.f32 0.2, %v1000_v61 }
 0x417   : > { %v1044_v5 = vsel %vm1043_vm3, %v1038_v3, -inf  ;;  %vm1005_vm8 = vcmp.gt.f32.partialorder %v997_v1, 0.0  ;;  %v1009_v6 = vmul.f32 0.2, %v997_v1 }
 0x418   : > { %v1048_v7 = vmax.f32 %v1044_v5, %v1045_v2  ;;  %v1014_v8 = vsel %vm1006_vm7, %v1000_v61, %v1010_v4  ;;  %v1287_v61 = vpop.trf.xlu0 }
 0x419   : > { %v1041_v9 = vsel %vm1029_vm6, %v1014_v8, -1e+30  ;;  %v1013_v10 = vsel %vm1005_vm8, %v997_v1, %v1009_v6 }
 0x41a   : > { %v1047_v11 = vsel %vm1043_vm3, %v1041_v9, -inf  ;;  %v1040_v12 = vsel %vm1028_vm9, %v1013_v10, -1e+30 }
 0x41b   : > { %v1046_v13 = vsel %vm1043_vm3, %v1040_v12, -inf }
 0x41c   : > { %v1049_v14 = vmax.f32 %v1046_v13, %v1047_v11  ;;  %v1288_v0 = vpop.trf.xlu0 }
 0x41e   : > { %v1050_v15 = vmax.f32 %v1048_v7, %v1049_v14  ;;  %v1419_v14 = vld [vmem:[#allocation7 + $0x10] sm:$0xff] }
 0x420   : > { %v1051_v16 = vrot.slane %v1050_v15, 4  ;;  %v1289_v7 = vpop.trf.xlu0 }
 0x422   : > { %v1052_v17 = vmax.f32 %v1050_v15, %v1051_v16  ;;  %v1417_v15 = vld [vmem:[#allocation7] sm:$0xff]  ;;  %v1420_v16 = vld [vmem:[#allocation7 + $0x18] sm:$0xff] }
 0x424   : > { %v1053_v18 = vrot.slane %v1052_v17, 2 }
 0x426   : > { %v1054_v19 = vmax.f32 %v1052_v17, %v1053_v18  ;;  %v1418_v18 = vld [vmem:[#allocation7 + $0x8] sm:$0xff] }
 0x428   : > { %v1055_v20 = vrot.slane %v1054_v19, 1 }
 0x42a   : > { %v1056_v22 = vmax.f32 %v1054_v19, %v1055_v20 }
 0x42c   : > { %v1057_v24 = vmax.f32 %v1042_v21, %v1056_v22 }
 0x42e   : > { %v1058_v25 = vsub.f32 %v1042_v21, %v1057_v24  ;;  %v1065_v26 = vrot.slane %v1057_v24, %v2494_v23  ;;  %1097 = vst.msk [vmem:[#allocation4] sm:$0x1] %vm1095_vm10, %v1057_v24 }
 0x430   : > { %v1059_v27 = vmul.f32 1.442695, %v1058_v25  ;;  %v1067_v28 = vsub.f32 %v1038_v3, %v1065_v26  ;;  %v1068_v29 = vsub.f32 %v1039_v63, %v1065_v26  ;;  %v1069_v30 = vsub.f32 %v1040_v12, %v1065_v26  ;;  %v1290_v12 = vpop.trf.xlu0 }
 0x431   : > { %v1070_v31 = vsub.f32 %v1041_v9, %v1065_v26 }
 0x432   : > { %2157 = vpow2.f32 %v1059_v27  ;;  %v1071_v32 = vmul.f32 1.442695, %v1067_v28  ;;  %v1073_v33 = vmul.f32 1.442695, %v1068_v29  ;;  %v1075_v38 = vmul.f32 1.442695, %v1069_v30 }
 0x433   : > { %v1077_v39 = vmul.f32 1.442695, %v1070_v31  ;;  %v1423_v31 = vld [vmem:[#allocation7 + $0x30] sm:$0xff] }
 0x434   : > { %2159 = vpow2.f32 %v1071_v32  ;;  %v1421_v32 = vld [vmem:[#allocation7 + $0x20] sm:$0xff] }
 0x435   : > { %2161 = vpow2.f32 %v1073_v33  ;;  %v1424_v33 = vld [vmem:[#allocation7 + $0x38] sm:$0xff] }
 0x436   : > { %2163 = vpow2.f32 %v1075_v38 }
 0x437   : > { %2165 = vpow2.f32 %v1077_v39  ;;  %v1422_v39 = vld [vmem:[#allocation7 + $0x28] sm:$0xff] }
 0x43c   : > { %v2158_v40 = vpop.eup %2157 }
 0x43d   : > { %2023 = vmatmul.mubr.msk.f32.vlgmr.msra.gmra.mrb[4].mxu1 %vm1043_vm3, %v2158_v40  ;;  %v1080_v58 = vmul.f32 %v2158_v40, %v1079_v56 }
 0x43e   : > { %v2160_v41 = vpop.eup %2159  ;;  %2029 = vmatprep.mubr.msk.bf16.mxu1 %vm1295_vm11, %v1287_v61 }
 0x43f   : > { %v2162_v42 = vpop.eup %2161  ;;  %v1081_v43 = vsel %vm1043_vm3, %v2160_v41, 0.0  ;;  %2014 = vmatprep.mubr.msk.f32.mxu0 %vm1043_vm3, %v2160_v41 }
 0x440   : > { %v2164_v44 = vpop.eup %2163  ;;  %v1082_v45 = vsel %vm1043_vm3, %v2162_v42, 0.0  ;;  %2015 = vmatmul.mubr.msk.f32.vlgmr.msra.gmra.mrb[8].mxu0 %vm1043_vm3, %v2162_v42 }
 0x441   : > { %v2166_v46 = vpop.eup %2165  ;;  %v1083_v47 = vadd.f32 %v1082_v45, %v1081_v43  ;;  %2017 = vmatprep.mubr.msk.f32.mxu0 %vm1043_vm3, %v2164_v44  ;;  %v1084_v48 = vsel %vm1043_vm3, %v2164_v44, 0.0 }
 0x442   : > { %v1086_v50 = vsel %vm1043_vm3, %v2166_v46, 0.0 }
 0x443   : > { %v1085_v49 = vadd.f32 %v1084_v48, %v1083_v47 }
 0x444   : > { %2018 = vmatmul.mubr.msk.f32.gmra.mrb[10].mxu0 %vm1043_vm3, %v2166_v46 }
 0x445   : > { %v1087_v51 = vadd.f32 %v1086_v50, %v1085_v49 }
 0x447   : > { %v1088_v52 = vrot.slane %v1087_v51, 4 }
 0x449   : > { %v1089_v53 = vadd.f32 %v1088_v52, %v1087_v51  ;;  %v1427_v51 = vld [vmem:[#allocation7 + $0x50] sm:$0xff]  ;;  %v1425_v52 = vld [vmem:[#allocation7 + $0x40] sm:$0xff] }
 0x44b   : > { %v1090_v54 = vrot.slane %v1089_v53, 2 }
 0x44d   : > { %v1091_v55 = vadd.f32 %v1090_v54, %v1089_v53  ;;  %v1428_v53 = vld [vmem:[#allocation7 + $0x58] sm:$0xff] }
 0x44f   : > { %v1092_v57 = vrot.slane %v1091_v55, 1 }
 0x451   : > { %v1093_v59 = vadd.f32 %v1092_v57, %v1091_v55  ;;  %v1426_v55 = vld [vmem:[#allocation7 + $0x48] sm:$0xff] }
 0x453   : > { %v1094_v60 = vadd.f32 %v1093_v59, %v1080_v58 }
 0x455   : > { %1096 = vst.msk [vmem:[#allocation5] sm:$0x1] %vm1095_vm10, %v1094_v60 }
 0x510   : > { %v1269_v62 = vpop.f32.mrb[4].mxu1 }
 0x511   : > { %v2024_v63 = vpop.f32.mrb[5].mxu1  ;;  %v2521_v13 = vrot.slane %v1269_v62, %v2494_v23 }
 0x513   : > { %v2016_v1 = vpop.f32.mrb[8].mxu0  ;;  %v1439_v17 = vmul.f32 %v2521_v13, %v1419_v14  ;;  %v1437_v20 = vmul.f32 %v2521_v13, %v1417_v15  ;;  %v1440_v24 = vmul.f32 %v2521_v13, %v1420_v16  ;;  %v1438_v27 = vmul.f32 %v2521_v13, %v1418_v18  ;;  %v1491_v16 = vld [vmem:[%s2576_s4] sm:$0x3] (!%p1737_p5) }
 0x514   : > { %v1274_v2 = vmul.f32 %v2016_v1, %v2477_v37  ;;  %v1181_v3 = vpop.f32.mrb[9].mxu0  ;;  %v1291_v37 = vpop.trf.xlu0  ;;  %v1443_v38 = vmul.f32 %v2521_v13, %v1423_v31  ;;  %v1441_v41 = vmul.f32 %v2521_v13, %v1421_v32  ;;  %v1444_v44 = vmul.f32 %v2521_v13, %v1424_v33 }
 0x515   : > { %v1273_v4 = vmul.f32 %v1181_v3, %v2472_v35  ;;  %v1442_v47 = vmul.f32 %v2521_v13, %v1422_v39  ;;  %v1447_v54 = vmul.f32 %v2521_v13, %v1427_v51  ;;  %v1445_v57 = vmul.f32 %v2521_v13, %v1425_v52  ;;  %v1431_v3 = vld [vmem:[#allocation7 + $0x70] sm:$0xff] }
 0x516   : > { %v1448_v60 = vmul.f32 %v2521_v13, %v1428_v53  ;;  %v1446_v63 = vmul.f32 %v2521_v13, %v1426_v55  ;;  %v2213_v18 = vmov (!%p1737_p5), 0.0  }
 0x517   : > { %v1277_v5 = vpack.c.bf16 %v1274_v2, %v1273_v4  ;;  %v2019_v6 = vpop.f32.mrb[10].mxu0  ;;  %v1429_v4 = vld [vmem:[#allocation7 + $0x60] sm:$0xff]  ;;  %2045 = vmatprep.subr.mxu0 (!%p1737_p5), %v2213_v18  ;;  %2047 = vmatprep.mubr.msk.f32.mxu0 (!%p1737_p5), %vm2214_vm12, %v2213_v18 }
 0x518   : > { %v1276_v8 = vmul.f32 %v2019_v6, %v2474_v36  ;;  %v1191_v9 = vpop.f32.mrb[11].mxu0  ;;  %v1292_v35 = vpop.trf.xlu0  ;;  %v1451_v6 = vmul.f32 %v2521_v13, %v1431_v3  ;;  %2046 = vmatpush3.msk.msra.mxu0 (!%p1737_p5), %vm1111_vm15, %v1491_v16 }
 0x519   : > { %v1275_v10 = vmul.f32 %v2470_v34, %v1191_v9  ;;  %2025 = vmatprep.subr.bf16.mxu1 %v1277_v5  ;;  %v1449_v9 = vmul.f32 %v2521_v13, %v1429_v4 }
 0x51a   : > { %2026 = vmatpush3.bf16.msra.mxu1 %v1277_v5  ;;  %v1432_v5 = vld [vmem:[#allocation7 + $0x78] sm:$0xff] }
 0x51b   : > { %v1278_v11 = vpack.c.bf16 %v1276_v8, %v1275_v10 }
 0x51c   : > { %v1293_v36 = vpop.trf.xlu0 }
 0x51d   : > { %2027 = vmatprep.subr.bf16.mxu1 %v1278_v11 }
 0x51e   : > { %2028 = vmatpush3.bf16.msra.mxu1 %v1278_v11 }
 0x520   : > { %v1294_v34 = vpop.trf.xlu0 }
 0x521   : > { %2030 = vmatmul.mubr.msk.bf16.vlgmr.msra.gmra.mrb[8].mxu1 %vm1295_vm11, %v1288_v0 }
 0x522   : > { %2033 = vmatprep.mubr.msk.bf16.mxu1 %vm1295_vm11, %v1289_v7  ;;  %v1430_v7 = vld [vmem:[#allocation7 + $0x68] sm:$0xff] }
 0x529   : > { %2034 = vmatmul.mubr.msk.bf16.gmra.mrb[12].mxu1 %vm1295_vm11, %v1290_v12  ;;  %v1452_v12 = vmul.f32 %v2521_v13, %v1432_v5 }
 0x52a   : > { %2037 = vmatprep.mubr.msk.bf16.mxu1 %vm1295_vm11, %v1291_v37 }
 0x531   : > { %2038 = vmatmul.mubr.msk.bf16.gmra.mrb[16].mxu1 %vm1295_vm11, %v1292_v35 }
 0x532   : > { %2041 = vmatprep.mubr.msk.bf16.mxu1 %vm1295_vm11, %v1293_v36  ;;  %v1450_v36 = vmul.f32 %v2521_v13, %v1430_v7 }
 0x539   : > { %2042 = vmatmul.mubr.msk.bf16.gmra.mrb[20].mxu1 %vm1295_vm11, %v1294_v34 }
 0x5f4   : > { %v2031_v19 = vpop.f32.mrb[8].mxu1 }
 0x5f5   : > { %v1455_v21 = vadd.f32 %v2031_v19, %v1439_v17  ;;  %v1354_v22 = vpop.f32.mrb[9].mxu1  ;;  %v1489_v17 = vld [vmem:[#allocation5] sm:$0x1] (!%p1737_p5) }
 0x5f6   : > { %v1453_v25 = vadd.f32 %v1437_v20, %v1354_v22  ;;  %v2032_v26 = vpop.f32.mrb[10].mxu1  ;;  %2167 = vrcp.f32 (!%p1737_p5), %v1489_v17 }
 0x5f7   : > { %1471 = vst [vmem:[#allocation7 + $0x10] sm:$0xff] %v1455_v21  ;;  %v1456_v28 = vadd.f32 %v2032_v26, %v1440_v24  ;;  %v1357_v29 = vpop.f32.mrb[11].mxu1 }
 0x5f8   : > { %1469 = vst [vmem:[#allocation7] sm:$0xff] %v1453_v25  ;;  %v1454_v30 = vadd.f32 %v1438_v27, %v1357_v29 }
 0x5f9   : > { %1472 = vst [vmem:[#allocation7 + $0x18] sm:$0xff] %v1456_v28 }
 0x5fa   : > { %1470 = vst [vmem:[#allocation7 + $0x8] sm:$0xff] %v1454_v30 }
 0x5fc   : > { %v2035_v40 = vpop.f32.mrb[12].mxu1 }
 0x5fd   : > { %v1459_v42 = vadd.f32 %v2035_v40, %v1443_v38  ;;  %v1370_v43 = vpop.f32.mrb[13].mxu1 }
 0x5fe   : > { %v1457_v45 = vadd.f32 %v1441_v41, %v1370_v43  ;;  %v2036_v46 = vpop.f32.mrb[14].mxu1  ;;  %v1570_v21 = vld [vmem:[#allocation7 + $0x10] sm:$0xff] (!%p1737_p5) }
 0x5ff   : > { %1475 = vst [vmem:[#allocation7 + $0x30] sm:$0xff] %v1459_v42  ;;  %v1460_v48 = vadd.f32 %v2036_v46, %v1444_v44  ;;  %v1373_v49 = vpop.f32.mrb[15].mxu1  ;;  %v1568_v19 = vld [vmem:[#allocation7] sm:$0xff] (!%p1737_p5) }
 0x600   : > { %1473 = vst [vmem:[#allocation7 + $0x20] sm:$0xff] %v1457_v45  ;;  %v1458_v50 = vadd.f32 %v1442_v47, %v1373_v49  ;;  %v2168_v13 = vpop.eup (!%p1737_p5), %2167  ;;  %v1571_v22 = vld [vmem:[#allocation7 + $0x18] sm:$0xff] (!%p1737_p5) }
 0x601   : > { %1476 = vst [vmem:[#allocation7 + $0x38] sm:$0xff] %v1460_v48  ;;  %2048 = vmatmul.mubr.msk.f32.vlgmr.msra.gmra.mrb[0].mxu0 (!%p1737_p5), %vm1043_vm3, %v2168_v13  ;;  %v1569_v20 = vld [vmem:[#allocation7 + $0x8] sm:$0xff] (!%p1737_p5) }
 0x602   : > { %1474 = vst [vmem:[#allocation7 + $0x28] sm:$0xff] %v1458_v50 }
 0x604   : > { %v2039_v56 = vpop.f32.mrb[16].mxu1 }
 0x605   : > { %v1463_v58 = vadd.f32 %v2039_v56, %v1447_v54  ;;  %v1386_v59 = vpop.f32.mrb[17].mxu1 }
 0x606   : > { %v1461_v61 = vadd.f32 %v1445_v57, %v1386_v59  ;;  %v2040_v62 = vpop.f32.mrb[18].mxu1  ;;  %v1574_v27 = vld [vmem:[#allocation7 + $0x30] sm:$0xff] (!%p1737_p5) }
 0x607   : > { %1479 = vst [vmem:[#allocation7 + $0x50] sm:$0xff] %v1463_v58  ;;  %v1464_v0 = vadd.f32 %v2040_v62, %v1448_v60  ;;  %v1389_v1 = vpop.f32.mrb[19].mxu1  ;;  %v1572_v25 = vld [vmem:[#allocation7 + $0x20] sm:$0xff] (!%p1737_p5) }
 0x608   : > { %1477 = vst [vmem:[#allocation7 + $0x40] sm:$0xff] %v1461_v61  ;;  %v1462_v2 = vadd.f32 %v1446_v63, %v1389_v1  ;;  %v1575_v28 = vld [vmem:[#allocation7 + $0x38] sm:$0xff] (!%p1737_p5) }
 0x609   : > { %1480 = vst [vmem:[#allocation7 + $0x58] sm:$0xff] %v1464_v0  ;;  %v1573_v26 = vld [vmem:[#allocation7 + $0x28] sm:$0xff] (!%p1737_p5) }
 0x60a   : > { %1478 = vst [vmem:[#allocation7 + $0x48] sm:$0xff] %v1462_v2 }
 0x60c   : > { %v2043_v8 = vpop.f32.mrb[20].mxu1  ;;  %1488 = sbr.rel (%p1737_p5) target bundleno = 1762 (0x6e2), region = 56 }
 0x60d   : > { %v1467_v10 = vadd.f32 %v2043_v8, %v1451_v6  ;;  %v1402_v11 = vpop.f32.mrb[21].mxu1 }
 0x60e   : > { %v1465_v37 = vadd.f32 %v1449_v9, %v1402_v11  ;;  %v2044_v35 = vpop.f32.mrb[22].mxu1  ;;  %v1578_v33 = vld [vmem:[#allocation7 + $0x50] sm:$0xff] (!%p1737_p5) }
 0x60f   : > { %1483 = vst [vmem:[#allocation7 + $0x70] sm:$0xff] %v1467_v10  ;;  %v1468_v34 = vadd.f32 %v2044_v35, %v1452_v12  ;;  %v1405_v14 = vpop.f32.mrb[23].mxu1  ;;  %v1576_v29 = vld [vmem:[#allocation7 + $0x40] sm:$0xff] (!%p1737_p5) }
 0x610   : > { %1481 = vst [vmem:[#allocation7 + $0x60] sm:$0xff] %v1465_v37  ;;  %v1466_v15 = vadd.f32 %v1450_v36, %v1405_v14  ;;  %v1579_v38 = vld [vmem:[#allocation7 + $0x58] sm:$0xff] (!%p1737_p5) }
 0x611   : > { %1484 = vst [vmem:[#allocation7 + $0x78] sm:$0xff] %v1468_v34  ;;  %v1577_v30 = vld [vmem:[#allocation7 + $0x48] sm:$0xff] (!%p1737_p5) }
 0x612   : > { %1482 = vst [vmem:[#allocation7 + $0x68] sm:$0xff] %v1466_v15 }
 0x616   : > { %v1582_v41 = vld [vmem:[#allocation7 + $0x70] sm:$0xff] }
 0x617   : > { %v1580_v39 = vld [vmem:[#allocation7 + $0x60] sm:$0xff] }
 0x618   : > { %v1583_v42 = vld [vmem:[#allocation7 + $0x78] sm:$0xff] }
 0x619   : > { %v1581_v40 = vld [vmem:[#allocation7 + $0x68] sm:$0xff] }
 0x6d4   : > { %v1564_v24 = vpop.f32.mrb[0].mxu0 }
 0x6d5   : > { %v1587_v31 = vrot.slane %v1564_v24, %v2494_v23  ;;  %v2049_v32 = vpop.f32.mrb[1].mxu0 }
 0x6d7   : > { %v1588_v43 = vmul.f32 %v1587_v31, %v1568_v19  ;;  %v1589_v44 = vmul.f32 %v1587_v31, %v1569_v20  ;;  %v1590_v45 = vmul.f32 %v1587_v31, %v1570_v21  ;;  %v1591_v46 = vmul.f32 %v1587_v31, %v1571_v22 }
 0x6d8   : > { %v1592_v47 = vmul.f32 %v1587_v31, %v1572_v25  ;;  %v1593_v48 = vmul.f32 %v1587_v31, %v1573_v26  ;;  %v1594_v49 = vmul.f32 %v1587_v31, %v1574_v27  ;;  %v1595_v50 = vmul.f32 %v1587_v31, %v1575_v28 }
 0x6d9   : > { %v1596_v51 = vmul.f32 %v1587_v31, %v1576_v29  ;;  %v1597_v52 = vmul.f32 %v1587_v31, %v1577_v30  ;;  %v1598_v53 = vmul.f32 %v1587_v31, %v1578_v33  ;;  %v1599_v54 = vmul.f32 %v1587_v31, %v1579_v38  ;;  %1604 = vst [vmem:[#allocation7] sm:$0xff] %v1588_v43 }
 0x6da   : > { %1605 = vst [vmem:[#allocation7 + $0x8] sm:$0xff] %v1589_v44  ;;  %1606 = vst [vmem:[#allocation7 + $0x10] sm:$0xff] %v1590_v45  ;;  %v1600_v23 = vmul.f32 %v1587_v31, %v1580_v39  ;;  %v1601_v55 = vmul.f32 %v1587_v31, %v1581_v40  ;;  %v1602_v56 = vmul.f32 %v1587_v31, %v1582_v41 }
 0x6db   : > { %1607 = vst [vmem:[#allocation7 + $0x18] sm:$0xff] %v1591_v46  ;;  %v1603_v57 = vmul.f32 %v1587_v31, %v1583_v42  ;;  %1608 = vst [vmem:[#allocation7 + $0x20] sm:$0xff] %v1592_v47 }
 0x6dc   : > { %1609 = vst [vmem:[#allocation7 + $0x28] sm:$0xff] %v1593_v48  ;;  %1610 = vst [vmem:[#allocation7 + $0x30] sm:$0xff] %v1594_v49 }
 0x6dd   : > { %1611 = vst [vmem:[#allocation7 + $0x38] sm:$0xff] %v1595_v50  ;;  %1612 = vst [vmem:[#allocation7 + $0x40] sm:$0xff] %v1596_v51 }
 0x6de   : > { %1613 = vst [vmem:[#allocation7 + $0x48] sm:$0xff] %v1597_v52  ;;  %1614 = vst [vmem:[#allocation7 + $0x50] sm:$0xff] %v1598_v53 }
 0x6df   : > { %1615 = vst [vmem:[#allocation7 + $0x58] sm:$0xff] %v1599_v54  ;;  %1616 = vst [vmem:[#allocation7 + $0x60] sm:$0xff] %v1600_v23 }
 0x6e0   : > { %1617 = vst [vmem:[#allocation7 + $0x68] sm:$0xff] %v1601_v55  ;;  %1618 = vst [vmem:[#allocation7 + $0x70] sm:$0xff] %v1602_v56 }
 0x6e1   : > { %1619 = vst [vmem:[#allocation7 + $0x78] sm:$0xff] %v1603_v57 }
 0x6e2 PF: > { %p2134_p6 = scmp.eq.s32.totalorder %s2264_s25, 1  ;;  %s2215_s15 = smov [#allocation7]  }
 0x6e3   : > { %s1626_s16 = sshll.u32 %s2215_s15, 4  ;;  %s1627_s16 = int_to_ptr.vmem [resolvable:$true] %s1626_s16 }
 0x6e4   : > { %s2169_s17 = scalar_lea.vmem %s1627_s16, 2048  ;;  %p2176_p10 = scmp.lt.s32.totalorder %s1627_s16, %s1627_s16 }
 0x6e5   : > { %p2170_p7 = scmp.ne.s32.totalorder %s1627_s16, %s2169_s17  ;;  %p2177_p11 = scmp.lt.s32.totalorder %s2169_s17, %s2169_s17 }
 0x6e7   : > { %p2171_p8 = pnand %p2170_p7, %p2134_p6  ;;  %p2178_p12 = por %p2177_p11, %p2176_p10 }
 0x6e9   : > { %p2172_p9 = pneg %p2171_p8 }
 0x6eb   : > { %p2179_p13 = pnand %p2178_p12, %p2172_p9 }
 0x6ed   : > { %2182 = shalt.err (!%p2179_p13)
}
 0x6ee   : > { %s2183_s30 = scalar_lea.hbm %s2579_s7, 2048 }
 0x6ef   : > { %p2184_p0 = scmp.ne.s32.totalorder %s2579_s7, %s2183_s30  ;;  %p2189_p3 = scmp.lt.u32.totalorder %s2183_s30, %s2579_s7 }
 0x6f1   : > { %p2185_p1 = pnand %p2184_p0, %p2134_p6 }
 0x6f3   : > { %p2186_p2 = pneg %p2185_p1 }
 0x6f5   : > { %p2191_p4 = pnand %p2189_p3, %p2186_p2 }
 0x6f7   : > { %2194 = shalt.err (!%p2191_p4)
}
 0x6f8   : > { %s2216_s23 = smov 128   ;;  %s2217_s26 = smov 8  }
 0x6f9   : > { %2131 = dma.vmem_to_hbm [thread:$0]  (%p2134_p6), %s1627_s16, 2048, %s2579_s7, [#allocation8], %s2216_s23, %s2216_s23, %s2217_s26  }
 0x6fa   : > { %2200 = dma.done.wait (%p2134_p6), [#allocation8], 2048  }
 0x6fb   : > { %2202 = vsyncadd (%p2134_p6), [#allocation8], 4294965248 }
 0x6fc PF: > { %s18_s24 = sadd.s32 1, %s2205_s24  }
 0x6fd   : > { %p15_p5 = scmp.ge.s32.totalorder %s18_s24, 4  }
 0x6ff   :  { %17 = sbr.rel (!%p15_p5) target bundleno = 1 (0x1), region = 86 }
 0x706   :  { %1642 = vsyncpa [#allocation8], 1 }
 0x707   :  { %1644 = vsyncpa [#allocation8 + $0x1], 1 }

</bundles_post_ra>
